<compile_context>
chip_gen: v5e
topology: v5e:2x2
jax: 0.10.0
libtpu: 0.0.40
codegen_flags: <defaults>
</compile_context>

<pallas_src>
import functools

import jax
import jax.numpy as jnp
from jax.experimental import pallas as pl
from jax.experimental.pallas import tpu as pltpu


def _device_kind():
    try:
        return jax.devices()[0].device_kind.lower()
    except Exception:
        return ""


def _pow2_floor(x):
    return 1 << (max(int(x), 1).bit_length() - 1)


def _auto_tile_n(d, emb_bytes, lbl_bytes, is_v7):
    """Pick the edge-tile size from a per-generation VMEM block budget."""
    d_pad = -(-d // 128) * 128                       # lane padding of the hidden dim
    # Double-buffered input blocks: 3 embedding streams + 1 (lane-padded) label
    # block.  Budget ~40 MiB on 128-MiB-VMEM parts (v5e/v6e), ~20 MiB on v7x.
    budget = (20 if is_v7 else 40) * 1024 * 1024
    per_row = 2 * (3 * d_pad * emb_bytes + 128 * lbl_bytes)
    t = max(32, budget // per_row)
    return min(_pow2_floor(t), 32768)


def _link_predict_kernel(head_ref, tail_ref, rel_ref, label_ref,
                         pred_ref, reg_ref,
                         pred_acc, reg_acc,
                         *, n_total, d_total, tile_n):
    c = pl.program_id(0)            # core-split axis (CORE_PARALLEL on v7x)
    i = pl.program_id(1)            # sequential edge-tile axis ("arbitrary")
    n_steps = pl.num_programs(1)

    @pl.when(i == 0)
    def _():
        pred_acc[...] = jnp.zeros_like(pred_acc)
        reg_acc[...] = jnp.zeros_like(reg_acc)

    h = head_ref[...].astype(jnp.float32)          # (TN, D)
    t = tail_ref[...].astype(jnp.float32)          # (TN, D)
    r = rel_ref[...].astype(jnp.float32)           # (TN, D)
    y = label_ref[...].astype(jnp.float32)         # (TN, 1)

    # Global row range of this (unclamped) step; rows >= n_total are either the
    # ragged tail of the last block or an idle (clamped) step -- mask them for
    # both loss terms (their VMEM contents are unspecified, never zero-padded).
    row0 = (c * n_steps + i) * tile_n
    rows = row0 + jax.lax.broadcasted_iota(jnp.int32, (tile_n, 1), 0)
    valid = rows < n_total                                     # (TN, 1)

    # DistMult scoring (single lane reduce) + numerically-stable BCE-with-logits:
    #   max(s, 0) - s*y + log(1 + exp(-|s|))
    score = jnp.sum(h * t * r, axis=-1, keepdims=True)         # (TN, 1)
    bce = (jnp.maximum(score, 0.0) - score * y
           + jnp.log1p(jnp.exp(-jnp.abs(score))))
    bce = jnp.where(valid, bce, 0.0)

    # L2 regularization: one fused squared term, masked per row.
    sq = jnp.where(valid, h * h + t * t + r * r, 0.0)          # (TN, D)

    # Full per-step reduction to scalars, accumulated into tiny lane-dense
    # (1, 8, 128) VMEM accumulators (no per-row accumulator store stream).
    pred_acc[...] = pred_acc[...] + jnp.sum(bce)
    reg_acc[...] = reg_acc[...] + jnp.sum(sq)

    @pl.when(i == n_steps - 1)
    def _():
        inv_n = jnp.float32(1.0 / n_total)
        inv_nd = jnp.float32(1.0 / (n_total * d_total))
        # Per-core partials, already normalized; wrapper sums across cores.
        pred_ref[...] = pred_acc[...] * inv_n
        reg_ref[...] = reg_acc[...] * inv_nd


def gnn_link_predict_loss(head, tail, rel, labels, *, tile_n=None, num_cores=None):
    """Returns (prediction_loss, regularization_loss), both scalar f32.

    head/tail/rel: (N, D) edge-gathered embeddings (f32 or bf16).
    labels:        (N,)   binary labels.
    """
    n, d = head.shape
    assert tail.shape == (n, d) and rel.shape == (n, d)
    assert labels.shape[0] == n

    kind = _device_kind()
    is_v7 = "v7" in kind
    if num_cores is None:
        num_cores = 2 if is_v7 else 1       # only v7x has 2 TensorCores / chip

    # bf16 labels: exact for {0,1}, halves the lane-padded label block + HBM.
    labels2d = labels.reshape(n, 1).astype(jnp.bfloat16)

    if tile_n is None:
        tile_n = _auto_tile_n(d, jnp.dtype(head.dtype).itemsize,
                              labels2d.dtype.itemsize, is_v7)
    # Shrink for small batches (power of two, >= 32 sublanes for any dtype).
    tile_n = max(32, min(int(tile_n), _pow2_floor(pl.cdiv(n, num_cores))))

    n_blocks = pl.cdiv(n, tile_n)
    steps_per_core = pl.cdiv(n_blocks, num_cores)

    kernel = functools.partial(_link_predict_kernel,
                               n_total=n, d_total=d, tile_n=tile_n)

    # Clamp idle trailing steps (when num_cores * steps_per_core > n_blocks)
    # onto the last real block; the in-kernel row mask zeroes their contribution.
    def emb_map(c, i):
        return (jnp.minimum(c * steps_per_core + i, n_blocks - 1), 0)

    emb_spec = pl.BlockSpec((tile_n, d), emb_map)
    lbl_spec = pl.BlockSpec((tile_n, 1), emb_map)
    # Lane-dense (8, 128) per-core output block; each core writes only its own.
    out_spec = pl.BlockSpec((1, 8, 128), lambda c, i: (c, 0, 0))
    out_shape = jax.ShapeDtypeStruct((num_cores, 8, 128), jnp.float32)

    if is_v7 and num_cores > 1:
        dim_sem = (pltpu.CORE_PARALLEL, pltpu.ARBITRARY)
    else:
        dim_sem = ("parallel", "arbitrary")
    vmem_limit = (32 if is_v7 else 64) * 1024 * 1024

    pred_part, reg_part = pl.pallas_call(
        kernel,
        out_shape=(out_shape, out_shape),
        grid_spec=pltpu.PrefetchScalarGridSpec(
            num_scalar_prefetch=0,
            grid=(num_cores, steps_per_core),
            in_specs=[emb_spec, emb_spec, emb_spec, lbl_spec],
            out_specs=[out_spec, out_spec],
            scratch_shapes=[pltpu.VMEM((1, 8, 128), jnp.float32),   # bce accum
                            pltpu.VMEM((1, 8, 128), jnp.float32)],  # reg accum
        ),
        compiler_params=pltpu.CompilerParams(
            dimension_semantics=dim_sem,
            vmem_limit_bytes=vmem_limit),
    )(head, tail, rel, labels2d)

    # Combine the per-core partial (already normalized) sums.
    pred = jnp.sum(pred_part[:, 0, 0])
    reg = jnp.sum(reg_part[:, 0, 0])
    return pred, reg


def _reference(head, tail, rel, labels):
    h = head.astype(jnp.float32)
    t = tail.astype(jnp.float32)
    r = rel.astype(jnp.float32)
    y = labels.astype(jnp.float32)
    score = jnp.sum(h * t * r, axis=-1)
    bce = jnp.maximum(score, 0.0) - score * y + jnp.log1p(jnp.exp(-jnp.abs(score)))
    pred = jnp.mean(bce)
    reg = jnp.mean(h * h) + jnp.mean(t * t) + jnp.mean(r * r)
    return pred, reg


if __name__ == "__main__":
    # TODO(synk): get_edge_set builds a Python set of edge tuples on host; no
    # device/Pallas equivalent (pure host-side bookkeeping), intentionally omitted.
    key = jax.random.PRNGKey(0)

    def run_case(n, d, key, dtype=jnp.float32, **kw):
        k_h, k_t, k_r, k_y = jax.random.split(key, 4)
        head = (jax.random.normal(k_h, (n, d)) * 0.1).astype(dtype)
        tail = (jax.random.normal(k_t, (n, d)) * 0.1).astype(dtype)
        rel = (jax.random.normal(k_r, (n, d)) * 0.1).astype(dtype)
        labels = (jax.random.uniform(k_y, (n,)) > 0.5).astype(jnp.float32)

        pred_loss, reg_loss = jax.block_until_ready(
            gnn_link_predict_loss(head, tail, rel, labels, **kw))
        ref_pred, ref_reg = _reference(head, tail, rel, labels)
        assert jnp.allclose(pred_loss, ref_pred, rtol=1e-5, atol=1e-5), (
            n, d, kw, pred_loss, ref_pred)
        assert jnp.allclose(reg_loss, ref_reg, rtol=1e-5, atol=1e-5), (
            n, d, kw, reg_loss, ref_reg)

    k1, k2, k3, k4 = jax.random.split(key, 4)
    run_case(256, 64, k1)                                   # aligned, auto tile/cores
    run_case(200, 64, k2, tile_n=64, num_cores=2)           # ragged last block, 2-core split
    run_case(200, 64, k3, tile_n=32, num_cores=2)           # idle clamped trailing step
    run_case(192, 64, k4, dtype=jnp.bfloat16)               # bf16 embeddings end-to-end

    print("KERNEL_OK")
</pallas_src>

<mosaic_0001>
module attributes {stable_mosaic.version = 11 : i64} {
  func.func @_link_predict_kernel(%arg0: i32, %arg1: i32, %arg2: memref<256x64xf32, #tpu.memory_space<vmem>>, %arg3: memref<256x64xf32, #tpu.memory_space<vmem>>, %arg4: memref<256x64xf32, #tpu.memory_space<vmem>>, %arg5: memref<256x1xbf16, #tpu.memory_space<vmem>>, %arg6: memref<1x8x128xf32, #tpu.memory_space<vmem>>, %arg7: memref<1x8x128xf32, #tpu.memory_space<vmem>>, %arg8: memref<1x8x128xf32, #tpu.memory_space<vmem>>, %arg9: memref<1x8x128xf32, #tpu.memory_space<vmem>>) attributes {dimension_semantics = [#tpu.dimension_semantics<parallel>, #tpu.dimension_semantics<arbitrary>], iteration_bounds = array<i64: 1, 1>, scalar_prefetch = 0 : i64, scratch_operands = 2 : i64, tpu.core_type = #tpu.core_type<tc>, window_params = [{transform_indices = @transform_0, window_bounds = array<i64: 256, 64>}, {transform_indices = @transform_1, window_bounds = array<i64: 256, 64>}, {transform_indices = @transform_2, window_bounds = array<i64: 256, 64>}, {transform_indices = @transform_3, window_bounds = array<i64: 256, 1>}, {transform_indices = @transform_4, window_bounds = array<i64: 1, 8, 128>}, {transform_indices = @transform_5, window_bounds = array<i64: 1, 8, 128>}]} {
    %c0_i32 = arith.constant 0 : i32
    %0 = arith.cmpi eq, %arg1, %c0_i32 : i32
    %1 = arith.extui %0 : i1 to i32
    %c0_i32_0 = arith.constant 0 : i32
    %2 = arith.cmpi ne, %1, %c0_i32_0 : i32
    scf.if %2 {
      %cst_29 = arith.constant 0.000000e+00 : f32
      %60 = vector.broadcast %cst_29 : f32 to vector<1x8x128xf32>
      %c0_30 = arith.constant 0 : index
      %c0_31 = arith.constant 0 : index
      %c0_32 = arith.constant 0 : index
      %61 = vector.load %arg8[%c0_30, %c0_31, %c0_32] : memref<1x8x128xf32, #tpu.memory_space<vmem>>, vector<1x8x128xf32>
      tpu.vector_store %arg8[%c0_30, %c0_31, %c0_32], %60 {strides = array<i32>} : memref<1x8x128xf32, #tpu.memory_space<vmem>>, vector<1x8x128xf32>,
      %cst_33 = arith.constant 0.000000e+00 : f32
      %62 = vector.broadcast %cst_33 : f32 to vector<1x8x128xf32>
      %c0_34 = arith.constant 0 : index
      %c0_35 = arith.constant 0 : index
      %c0_36 = arith.constant 0 : index
      %63 = vector.load %arg9[%c0_34, %c0_35, %c0_36] : memref<1x8x128xf32, #tpu.memory_space<vmem>>, vector<1x8x128xf32>
      tpu.vector_store %arg9[%c0_34, %c0_35, %c0_36], %62 {strides = array<i32>} : memref<1x8x128xf32, #tpu.memory_space<vmem>>, vector<1x8x128xf32>,
    } else {
    }
    %c0 = arith.constant 0 : index
    %c0_1 = arith.constant 0 : index
    %3 = vector.load %arg2[%c0, %c0_1] : memref<256x64xf32, #tpu.memory_space<vmem>>, vector<256x64xf32>
    %c0_2 = arith.constant 0 : index
    %c0_3 = arith.constant 0 : index
    %4 = vector.load %arg3[%c0_2, %c0_3] : memref<256x64xf32, #tpu.memory_space<vmem>>, vector<256x64xf32>
    %c0_4 = arith.constant 0 : index
    %c0_5 = arith.constant 0 : index
    %5 = vector.load %arg4[%c0_4, %c0_5] : memref<256x64xf32, #tpu.memory_space<vmem>>, vector<256x64xf32>
    %c0_6 = arith.constant 0 : index
    %c0_7 = arith.constant 0 : index
    %6 = vector.load %arg5[%c0_6, %c0_7] : memref<256x1xbf16, #tpu.memory_space<vmem>>, vector<256x1xbf16>
    %7 = arith.extf %6 : vector<256x1xbf16> to vector<256x1xf32>
    %c1_i32 = arith.constant 1 : i32
    %8 = arith.muli %arg0, %c1_i32 : i32
    %9 = arith.addi %8, %arg1 : i32
    %c256_i32 = arith.constant 256 : i32
    %10 = arith.muli %9, %c256_i32 : i32
    %11 = tpu.iota {dimensions = array<i32: 0>} : vector<256x1xi32>
    %12 = vector.broadcast %10 : i32 to vector<256x1xi32>
    %13 = arith.addi %12, %11 : vector<256x1xi32>
    %c256_i32_8 = arith.constant 256 : i32
    %14 = vector.broadcast %c256_i32_8 : i32 to vector<256x1xi32>
    %15 = arith.cmpi slt, %13, %14 : vector<256x1xi32>
    %16 = arith.mulf %3, %4 : vector<256x64xf32>
    %17 = arith.mulf %16, %5 : vector<256x64xf32>
    %cst = arith.constant dense<0.000000e+00> : vector<256xf32>
    %18 = vector.multi_reduction <add>, %17, %cst [1] : vector<256x64xf32> to vector<256xf32>
    %19 = vector.shape_cast %18 : vector<256xf32> to vector<256x1xf32>
    %cst_9 = arith.constant 0.000000e+00 : f32
    %20 = vector.broadcast %cst_9 : f32 to vector<256x1xf32>
    %21 = arith.maximumf %19, %20 : vector<256x1xf32>
    %22 = arith.mulf %19, %7 : vector<256x1xf32>
    %23 = arith.subf %21, %22 : vector<256x1xf32>
    %24 = math.absf %19 : vector<256x1xf32>
    %cst_10 = arith.constant 0.000000e+00 : f32
    %25 = vector.broadcast %cst_10 : f32 to vector<256x1xf32>
    %26 = arith.subf %25, %24 : vector<256x1xf32>
    %27 = math.exp %26 : vector<256x1xf32>
    %28 = math.log1p %27 : vector<256x1xf32>
    %29 = arith.addf %23, %28 : vector<256x1xf32>
    %cst_11 = arith.constant 0.000000e+00 : f32
    %30 = vector.broadcast %cst_11 : f32 to vector<256x1xf32>
    %31 = arith.select %15, %29, %30 : vector<256x1xi1>, vector<256x1xf32>
    %32 = arith.mulf %3, %3 : vector<256x64xf32>
    %33 = arith.mulf %4, %4 : vector<256x64xf32>
    %34 = arith.addf %32, %33 : vector<256x64xf32>
    %35 = arith.mulf %5, %5 : vector<256x64xf32>
    %36 = arith.addf %34, %35 : vector<256x64xf32>
    %cst_12 = arith.constant 0.000000e+00 : f32
    %37 = vector.shape_cast %15 : vector<256x1xi1> to vector<256x1xi1>
    %38 = vector.broadcast %37 : vector<256x1xi1> to vector<256x64xi1>
    %39 = vector.broadcast %cst_12 : f32 to vector<256x64xf32>
    %40 = arith.select %38, %36, %39 : vector<256x64xi1>, vector<256x64xf32>
    %c0_13 = arith.constant 0 : index
    %c0_14 = arith.constant 0 : index
    %c0_15 = arith.constant 0 : index
    %41 = vector.load %arg8[%c0_13, %c0_14, %c0_15] : memref<1x8x128xf32, #tpu.memory_space<vmem>>, vector<1x8x128xf32>
    %42 = vector.shape_cast %31 : vector<256x1xf32> to vector<1x256x1xf32>
    %cst_16 = arith.constant dense<0.000000e+00> : vector<1xf32>
    %43 = vector.multi_reduction <add>, %42, %cst_16 [1, 2] : vector<1x256x1xf32> to vector<1xf32>
    %44 = vector.shape_cast %43 : vector<1xf32> to vector<1x1x1xf32>
    %45 = vector.extract %44[0, 0, 0] : f32 from vector<1x1x1xf32>
    %46 = vector.broadcast %45 : f32 to vector<1x8x128xf32>
    %47 = arith.addf %41, %46 : vector<1x8x128xf32>
    %c0_17 = arith.constant 0 : index
    %c0_18 = arith.constant 0 : index
    %c0_19 = arith.constant 0 : index
    %48 = vector.load %arg8[%c0_17, %c0_18, %c0_19] : memref<1x8x128xf32, #tpu.memory_space<vmem>>, vector<1x8x128xf32>
    tpu.vector_store %arg8[%c0_17, %c0_18, %c0_19], %47 {strides = array<i32>} : memref<1x8x128xf32, #tpu.memory_space<vmem>>, vector<1x8x128xf32>,
    %c0_20 = arith.constant 0 : index
    %c0_21 = arith.constant 0 : index
    %c0_22 = arith.constant 0 : index
    %49 = vector.load %arg9[%c0_20, %c0_21, %c0_22] : memref<1x8x128xf32, #tpu.memory_space<vmem>>, vector<1x8x128xf32>
    %50 = vector.shape_cast %40 : vector<256x64xf32> to vector<1x256x64xf32>
    %cst_23 = arith.constant dense<0.000000e+00> : vector<1xf32>
    %51 = vector.multi_reduction <add>, %50, %cst_23 [1, 2] : vector<1x256x64xf32> to vector<1xf32>
    %52 = vector.shape_cast %51 : vector<1xf32> to vector<1x1x1xf32>
    %53 = vector.extract %52[0, 0, 0] : f32 from vector<1x1x1xf32>
    %54 = vector.broadcast %53 : f32 to vector<1x8x128xf32>
    %55 = arith.addf %49, %54 : vector<1x8x128xf32>
    %c0_24 = arith.constant 0 : index
    %c0_25 = arith.constant 0 : index
    %c0_26 = arith.constant 0 : index
    %56 = vector.load %arg9[%c0_24, %c0_25, %c0_26] : memref<1x8x128xf32, #tpu.memory_space<vmem>>, vector<1x8x128xf32>
    tpu.vector_store %arg9[%c0_24, %c0_25, %c0_26], %55 {strides = array<i32>} : memref<1x8x128xf32, #tpu.memory_space<vmem>>, vector<1x8x128xf32>,
    %c0_i32_27 = arith.constant 0 : i32
    %57 = arith.cmpi eq, %arg1, %c0_i32_27 : i32
    %58 = arith.extui %57 : i1 to i32
    %c0_i32_28 = arith.constant 0 : i32
    %59 = arith.cmpi ne, %58, %c0_i32_28 : i32
    scf.if %59 {
      %c0_29 = arith.constant 0 : index
      %c0_30 = arith.constant 0 : index
      %c0_31 = arith.constant 0 : index
      %60 = vector.load %arg8[%c0_29, %c0_30, %c0_31] : memref<1x8x128xf32, #tpu.memory_space<vmem>>, vector<1x8x128xf32>
      %cst_32 = arith.constant 3.906250e-03 : f32
      %61 = vector.broadcast %cst_32 : f32 to vector<1x8x128xf32>
      %62 = arith.mulf %60, %61 : vector<1x8x128xf32>
      %c0_33 = arith.constant 0 : index
      %c0_34 = arith.constant 0 : index
      %c0_35 = arith.constant 0 : index
      %63 = vector.load %arg6[%c0_33, %c0_34, %c0_35] : memref<1x8x128xf32, #tpu.memory_space<vmem>>, vector<1x8x128xf32>
      tpu.vector_store %arg6[%c0_33, %c0_34, %c0_35], %62 {strides = array<i32>} : memref<1x8x128xf32, #tpu.memory_space<vmem>>, vector<1x8x128xf32>,
      %c0_36 = arith.constant 0 : index
      %c0_37 = arith.constant 0 : index
      %c0_38 = arith.constant 0 : index
      %64 = vector.load %arg9[%c0_36, %c0_37, %c0_38] : memref<1x8x128xf32, #tpu.memory_space<vmem>>, vector<1x8x128xf32>
      %cst_39 = arith.constant 6.10351563E-5 : f32
      %65 = vector.broadcast %cst_39 : f32 to vector<1x8x128xf32>
      %66 = arith.mulf %64, %65 : vector<1x8x128xf32>
      %c0_40 = arith.constant 0 : index
      %c0_41 = arith.constant 0 : index
      %c0_42 = arith.constant 0 : index
      %67 = vector.load %arg7[%c0_40, %c0_41, %c0_42] : memref<1x8x128xf32, #tpu.memory_space<vmem>>, vector<1x8x128xf32>
      tpu.vector_store %arg7[%c0_40, %c0_41, %c0_42], %66 {strides = array<i32>} : memref<1x8x128xf32, #tpu.memory_space<vmem>>, vector<1x8x128xf32>,
    } else {
    }
    return
  }
  func.func @transform_0(%arg0: i32, %arg1: i32) -> (i32, i32) {
    %c1_i32 = arith.constant 1 : i32
    %0 = arith.muli %arg0, %c1_i32 : i32
    %1 = arith.addi %0, %arg1 : i32
    %c0_i32 = arith.constant 0 : i32
    %2 = arith.minsi %1, %c0_i32 : i32
    %c0_i32_0 = arith.constant 0 : i32
    %c0_i32_1 = arith.constant 0 : i32
    return %2, %c0_i32_0 : i32, i32
  }
  func.func @transform_1(%arg0: i32, %arg1: i32) -> (i32, i32) {
    %c1_i32 = arith.constant 1 : i32
    %0 = arith.muli %arg0, %c1_i32 : i32
    %1 = arith.addi %0, %arg1 : i32
    %c0_i32 = arith.constant 0 : i32
    %2 = arith.minsi %1, %c0_i32 : i32
    %c0_i32_0 = arith.constant 0 : i32
    %c0_i32_1 = arith.constant 0 : i32
    return %2, %c0_i32_0 : i32, i32
  }
  func.func @transform_2(%arg0: i32, %arg1: i32) -> (i32, i32) {
    %c1_i32 = arith.constant 1 : i32
    %0 = arith.muli %arg0, %c1_i32 : i32
    %1 = arith.addi %0, %arg1 : i32
    %c0_i32 = arith.constant 0 : i32
    %2 = arith.minsi %1, %c0_i32 : i32
    %c0_i32_0 = arith.constant 0 : i32
    %c0_i32_1 = arith.constant 0 : i32
    return %2, %c0_i32_0 : i32, i32
  }
  func.func @transform_3(%arg0: i32, %arg1: i32) -> (i32, i32) {
    %c1_i32 = arith.constant 1 : i32
    %0 = arith.muli %arg0, %c1_i32 : i32
    %1 = arith.addi %0, %arg1 : i32
    %c0_i32 = arith.constant 0 : i32
    %2 = arith.minsi %1, %c0_i32 : i32
    %c0_i32_0 = arith.constant 0 : i32
    %c0_i32_1 = arith.constant 0 : i32
    return %2, %c0_i32_0 : i32, i32
  }
  func.func @transform_4(%arg0: i32, %arg1: i32) -> (i32, i32, i32) {
    %c0_i32 = arith.constant 0 : i32
    %c0_i32_0 = arith.constant 0 : i32
    %c0_i32_1 = arith.constant 0 : i32
    return %arg0, %c0_i32, %c0_i32_0 : i32, i32, i32
  }
  func.func @transform_5(%arg0: i32, %arg1: i32) -> (i32, i32, i32) {
    %c0_i32 = arith.constant 0 : i32
    %c0_i32_0 = arith.constant 0 : i32
    %c0_i32_1 = arith.constant 0 : i32
    return %arg0, %c0_i32, %c0_i32_0 : i32, i32, i32
  }
}

</mosaic_0001>

<bundles_post_ra>
// kernel: tpu_custom_call.1
= control target key start
LH: loop header
LB: loop body
LE: loop exit
PB: predicated region body
PF: predicated region fallthrough
CT: control target
= control target key end

     0   :  { %11 = vsyncpa [#allocation5], 0  ;;  %vm479_vm0 = vcmask 523264   ;;  %s3013_s0 = inlined_call_operand.vmem [shape: f32[256,64], index: 0, kind: input, shape index: {}]   ;;  %s3014_s1 = inlined_call_operand.vmem [shape: f32[256,64], index: 1, kind: input, shape index: {}]   ;;  %s3015_s2 = inlined_call_operand.vmem [shape: f32[256,64], index: 2, kind: input, shape index: {}]   ;;  %s3016_s3 = inlined_call_operand.vmem [shape: bf16[256,1], index: 3, kind: input, shape index: {}]   ;;  %s3017_s4 = inlined_call_operand.hbm [shape: f32[1,8,128], index: 4, kind: output, shape index: {0}]   ;;  %s3018_s5 = inlined_call_operand.hbm [shape: f32[1,8,128], index: 5, kind: output, shape index: {1}]  }
   0x1   :  { %v159_v0 = vld [vmem:[%s3013_s0 + $0x20] sm:$0xff]  ;;  %v157_v7 = vld [vmem:[%s3013_s0 + $0x10] sm:$0xff]  ;;  %v160_v21 = vld [vmem:[%s3013_s0 + $0x28] sm:$0xff] }
   0x2   :  { %v191_v1 = vld [vmem:[%s3014_s1 + $0x20] sm:$0xff]  ;;  %v1156_v4 = vmul.f32 %v159_v0, %v159_v0  ;;  %v189_v8 = vld [vmem:[%s3014_s1 + $0x10] sm:$0xff]  ;;  %v1154_v11 = vmul.f32 %v157_v7, %v157_v7  ;;  %v192_v22 = vld [vmem:[%s3014_s1 + $0x28] sm:$0xff]  ;;  %v1157_v37 = vmul.f32 %v160_v21, %v160_v21 }
   0x3   :  { %v223_v2 = vld [vmem:[%s3015_s2 + $0x20] sm:$0xff]  ;;  %v419_v3 = vmul.f32 %v191_v1, %v159_v0  ;;  %v1188_v5 = vmul.f32 %v191_v1, %v191_v1  ;;  %v221_v9 = vld [vmem:[%s3015_s2 + $0x10] sm:$0xff]  ;;  %v417_v10 = vmul.f32 %v189_v8, %v157_v7  ;;  %v1186_v12 = vmul.f32 %v189_v8, %v189_v8  ;;  %v224_v27 = vld [vmem:[%s3015_s2 + $0x28] sm:$0xff] }
   0x4   :  { %v1252_v6 = vmul.f32 %v223_v2, %v223_v2  ;;  %v1250_v13 = vmul.f32 %v221_v9, %v221_v9  ;;  %v155_v14 = vld [vmem:[%s3013_s0] sm:$0xff]  ;;  %v420_v31 = vmul.f32 %v192_v22, %v160_v21  ;;  %v158_v32 = vld [vmem:[%s3013_s0 + $0x18] sm:$0xff]  ;;  %v1189_v40 = vmul.f32 %v192_v22, %v192_v22  ;;  %v156_v42 = vld [vmem:[%s3013_s0 + $0x8] sm:$0xff] }
   0x5   :  { %v187_v15 = vld [vmem:[%s3014_s1] sm:$0xff]  ;;  %v451_v17 = vmul.f32 %v419_v3, %v223_v2  ;;  %v1220_v18 = vadd.f32 %v1188_v5, %v1156_v4  ;;  %v1152_v20 = vmul.f32 %v155_v14, %v155_v14  ;;  %v449_v23 = vmul.f32 %v417_v10, %v221_v9  ;;  %v190_v33 = vld [vmem:[%s3014_s1 + $0x18] sm:$0xff]  ;;  %v188_v43 = vld [vmem:[%s3014_s1 + $0x8] sm:$0xff] }
   0x6   :  { %v219_v16 = vld [vmem:[%s3015_s2] sm:$0xff]  ;;  %v415_v19 = vmul.f32 %v187_v15, %v155_v14  ;;  %v1218_v24 = vadd.f32 %v1186_v12, %v1154_v11  ;;  %v1184_v25 = vmul.f32 %v187_v15, %v187_v15  ;;  %v452_v39 = vmul.f32 %v420_v31, %v224_v27  ;;  %v222_v41 = vld [vmem:[%s3015_s2 + $0x18] sm:$0xff]  ;;  %v220_v52 = vld [vmem:[%s3015_s2 + $0x8] sm:$0xff] }
   0x7   :  { %v1248_v26 = vmul.f32 %v219_v16, %v219_v16  ;;  %v492_v28 = vsel %vm479_vm0, %v451_v17, 0.0  ;;  %v1284_v29 = vadd.f32 %v1252_v6, %v1220_v18  ;;  %v486_v34 = vsel %vm479_vm0, %v449_v23, 0.0  ;;  %v163_v53 = vld [vmem:[%s3013_s0 + $0x40] sm:$0xff]  ;;  %v162_v4 = vld [vmem:[%s3013_s0 + $0x38] sm:$0xff]  ;;  %v161_v15 = vld [vmem:[%s3013_s0 + $0x30] sm:$0xff] }
   0x8   :  { %v447_v30 = vmul.f32 %v415_v19, %v219_v16  ;;  %493 = vadd.xlane.f32.xlu2 %v492_v28  ;;  %v1282_v35 = vadd.f32 %v1250_v13, %v1218_v24  ;;  %v1216_v36 = vadd.f32 %v1184_v25, %v1152_v20  ;;  %487 = vadd.xlane.f32.xlu1 %v486_v34  ;;  %v195_v54 = vld [vmem:[%s3014_s1 + $0x40] sm:$0xff]  ;;  %v495_v55 = vsel %vm479_vm0, %v452_v39, 0.0  ;;  %v194_v5 = vld [vmem:[%s3014_s1 + $0x38] sm:$0xff]  ;;  %v193_v16 = vld [vmem:[%s3014_s1 + $0x30] sm:$0xff] }
   0x9   :  { %v1978_v44 = vsel %vm479_vm0, %v1284_v29, 0.0  ;;  %v1253_v46 = vmul.f32 %v224_v27, %v224_v27  ;;  %v418_v47 = vmul.f32 %v190_v33, %v158_v32  ;;  %v1221_v49 = vadd.f32 %v1189_v40, %v1157_v37  ;;  %v227_v2 = vld [vmem:[%s3015_s2 + $0x40] sm:$0xff]  ;;  %v226_v14 = vld [vmem:[%s3015_s2 + $0x38] sm:$0xff]  ;;  %v225_v25 = vld [vmem:[%s3015_s2 + $0x30] sm:$0xff] }
   0xa   :  { %v480_v38 = vsel %vm479_vm0, %v447_v30, 0.0  ;;  %v1280_v45 = vadd.f32 %v1248_v26, %v1216_v36  ;;  %v1489_v48 = vsel %vm479_vm0, %v1282_v35, 0.0  ;;  %v1155_v50 = vmul.f32 %v158_v32, %v158_v32  ;;  %v166_v26 = vld [vmem:[%s3013_s0 + $0x58] sm:$0xff] }
   0xb   :  { %481 = vadd.xlane.f32.xlu0 %v480_v38  ;;  %v1187_v51 = vmul.f32 %v190_v33, %v190_v33  ;;  %v450_v56 = vmul.f32 %v418_v47, %v222_v41  ;;  %v1251_v57 = vmul.f32 %v222_v41, %v222_v41  ;;  %v416_v58 = vmul.f32 %v188_v43, %v156_v42  ;;  %v198_v27 = vld [vmem:[%s3014_s1 + $0x58] sm:$0xff]  ;;  %v197_v47 = vld [vmem:[%s3014_s1 + $0x50] sm:$0xff] }
   0xc   :  { %v1285_v59 = vadd.f32 %v1253_v46, %v1221_v49  ;;  %v1153_v61 = vmul.f32 %v156_v42, %v156_v42  ;;  %v1185_v62 = vmul.f32 %v188_v43, %v188_v43  ;;  %v1249_v1 = vmul.f32 %v220_v52, %v220_v52  ;;  %v230_v39 = vld [vmem:[%s3015_s2 + $0x58] sm:$0xff]  ;;  %v165_v46 = vld [vmem:[%s3013_s0 + $0x50] sm:$0xff] }
   0xd   :  { %v1219_v60 = vadd.f32 %v1187_v51, %v1155_v50  ;;  %v489_v63 = vsel %vm479_vm0, %v450_v56, 0.0  ;;  %v448_v0 = vmul.f32 %v416_v58, %v220_v52  ;;  %v423_v3 = vmul.f32 %v195_v54, %v163_v53 }
   0xe   :  { %v1486_v6 = vsel %vm479_vm0, %v1280_v45, 0.0  ;;  %v1217_v8 = vadd.f32 %v1185_v62, %v1153_v61  ;;  %v1160_v9 = vmul.f32 %v163_v53, %v163_v53  ;;  %v2003_v10 = vsel %vm479_vm0, %v1285_v59, 0.0 }
   0xf   :  { %v1283_v7 = vadd.f32 %v1251_v57, %v1219_v60  ;;  %v483_v11 = vsel %vm479_vm0, %v448_v0, 0.0  ;;  %v1192_v12 = vmul.f32 %v195_v54, %v195_v54  ;;  %v1256_v13 = vmul.f32 %v227_v2, %v227_v2 }
  0x10   :  { %496 = vadd.xlane.f32.xlu2 %v495_v55  ;;  %490 = vadd.xlane.f32.xlu1 %v489_v63  ;;  %v1281_v17 = vadd.f32 %v1249_v1, %v1217_v8  ;;  %v455_v18 = vmul.f32 %v423_v3, %v227_v2  ;;  %v422_v19 = vmul.f32 %v194_v5, %v162_v4 }
  0x11   :  { %v1159_v20 = vmul.f32 %v162_v4, %v162_v4  ;;  %v1491_v21 = vsel %vm479_vm0, %v1283_v7, 0.0  ;;  %v1224_v22 = vadd.f32 %v1192_v12, %v1160_v9  ;;  %v1191_v23 = vmul.f32 %v194_v5, %v194_v5 }
  0x12   :  { %v1255_v24 = vmul.f32 %v226_v14, %v226_v14  ;;  %v1487_v28 = vsel %vm479_vm0, %v1281_v17, 0.0  ;;  %v454_v29 = vmul.f32 %v422_v19, %v226_v14  ;;  %v421_v30 = vmul.f32 %v193_v16, %v161_v15 }
  0x13   :  { %484 = vadd.xlane.f32.xlu0 %v483_v11  ;;  %v1158_v31 = vmul.f32 %v161_v15, %v161_v15  ;;  %v1488_v32 = vadd.f32 %v1487_v28, %v1486_v6  ;;  %v1288_v33 = vadd.f32 %v1256_v13, %v1224_v22  ;;  %v1223_v34 = vadd.f32 %v1191_v23, %v1159_v20 }
  0x14   :  { %v1190_v35 = vmul.f32 %v193_v16, %v193_v16  ;;  %v504_v36 = vsel %vm479_vm0, %v455_v18, 0.0  ;;  %v453_v37 = vmul.f32 %v421_v30, %v225_v25  ;;  %v1254_v38 = vmul.f32 %v225_v25, %v225_v25 }
  0x15   :  { %v426_v40 = vmul.f32 %v198_v27, %v166_v26  ;;  %v1490_v41 = vadd.f32 %v1489_v48, %v1488_v32  ;;  %v501_v42 = vsel %vm479_vm0, %v454_v29, 0.0  ;;  %v1287_v43 = vadd.f32 %v1255_v24, %v1223_v34 }
  0x16   :  { %v1222_v45 = vadd.f32 %v1190_v35, %v1158_v31  ;;  %v1501_v49 = vsel %vm479_vm0, %v1288_v33, 0.0  ;;  %v498_v50 = vsel %vm479_vm0, %v453_v37, 0.0  ;;  %v1163_v51 = vmul.f32 %v166_v26, %v166_v26 }
  0x17   :  { %v1195_v52 = vmul.f32 %v198_v27, %v198_v27 }
  0x18   :  { %12 = vsyncpa [#allocation7], 0  ;;  %v1492_v48 = vadd.f32 %v1491_v21, %v1490_v41  ;;  %505 = vadd.xlane.f32.xlu2 %v504_v36  ;;  %v1286_v53 = vadd.f32 %v1254_v38, %v1222_v45  ;;  %v458_v54 = vmul.f32 %v426_v40, %v230_v39  ;;  %v1259_v55 = vmul.f32 %v230_v39, %v230_v39  ;;  %v229_v56 = vld [vmem:[%s3015_s2 + $0x50] sm:$0xff]  ;;  %v164_v57 = vld [vmem:[%s3013_s0 + $0x48] sm:$0xff]  ;;  %s1577_s14 = sshll.u32 %s3017_s4, 4  ;;  %s1892_s15 = smov [#allocation6]   ;;  %s1578_s14 = int_to_ptr.hbm [resolvable:$true] %s1577_s14 }
  0x19   :  { %v196_v58 = vld [vmem:[%s3014_s1 + $0x48] sm:$0xff]  ;;  %v1499_v59 = vsel %vm479_vm0, %v1287_v43, 0.0  ;;  %502 = vadd.xlane.f32.xlu1 %v501_v42  ;;  %v1227_v60 = vadd.f32 %v1195_v52, %v1163_v51  ;;  %v425_v61 = vmul.f32 %v197_v47, %v165_v46  ;;  %v1162_v62 = vmul.f32 %v165_v46, %v165_v46  ;;  %v169_v4 = vld [vmem:[%s3013_s0 + $0x70] sm:$0xff]  ;;  %v167_v33 = vld [vmem:[%s3013_s0 + $0x60] sm:$0xff]  ;;  %s1586_s16 = sshll.u32 %s1892_s15, 4  ;;  %s1588_s20 = sshll.u32 %s3018_s5, 4  ;;  %s1587_s16 = int_to_ptr.vmem [resolvable:$true] %s1586_s16  ;;  %s1589_s20 = int_to_ptr.hbm [resolvable:$true] %s1588_s20 }
  0x1a   :  { %v1494_v63 = vadd.f32 %v1978_v44, %v1492_v48  ;;  %v1497_v0 = vsel %vm479_vm0, %v1286_v53, 0.0  ;;  %v1194_v1 = vmul.f32 %v197_v47, %v197_v47  ;;  %v1258_v2 = vmul.f32 %v229_v56, %v229_v56  ;;  %v228_v3 = vld [vmem:[%s3015_s2 + $0x48] sm:$0xff]  ;;  %v201_v5 = vld [vmem:[%s3014_s1 + $0x70] sm:$0xff]  ;;  %v199_v34 = vld [vmem:[%s3014_s1 + $0x60] sm:$0xff] }
  0x1b   :  { %499 = vadd.xlane.f32.xlu0 %v498_v50  ;;  %v1291_v6 = vadd.f32 %v1259_v55, %v1227_v60  ;;  %v457_v7 = vmul.f32 %v425_v61, %v229_v56  ;;  %v424_v44 = vmul.f32 %v196_v58, %v164_v57  ;;  %v1161_v8 = vmul.f32 %v164_v57, %v164_v57  ;;  %v233_v17 = vld [vmem:[%s3015_s2 + $0x70] sm:$0xff]  ;;  %v168_v19 = vld [vmem:[%s3013_s0 + $0x68] sm:$0xff]  ;;  %v231_v43 = vld [vmem:[%s3015_s2 + $0x60] sm:$0xff] }
  0x1c   :  { %v1496_v9 = vadd.f32 %v2003_v10, %v1494_v63  ;;  %v1226_v11 = vadd.f32 %v1194_v1, %v1162_v62  ;;  %v1193_v12 = vmul.f32 %v196_v58, %v196_v58  ;;  %v1257_v13 = vmul.f32 %v228_v3, %v228_v3  ;;  %v200_v10 = vld [vmem:[%s3014_s1 + $0x68] sm:$0xff]  ;;  %v171_v60 = vld [vmem:[%s3013_s0 + $0x80] sm:$0xff] }
  0x1d   :  { %v513_v14 = vsel %vm479_vm0, %v458_v54, 0.0  ;;  %v510_v15 = vsel %vm479_vm0, %v457_v7, 0.0  ;;  %v456_v16 = vmul.f32 %v424_v44, %v228_v3  ;;  %v429_v18 = vmul.f32 %v201_v5, %v169_v4  ;;  %v232_v28 = vld [vmem:[%s3015_s2 + $0x68] sm:$0xff]  ;;  %v203_v61 = vld [vmem:[%s3014_s1 + $0x80] sm:$0xff]  ;;  %v170_v7 = vld [vmem:[%s3013_s0 + $0x78] sm:$0xff] }
  0x1e   :  { %v1498_v20 = vadd.f32 %v1497_v0, %v1496_v9  ;;  %v1290_v21 = vadd.f32 %v1258_v2, %v1226_v11  ;;  %v1225_v22 = vadd.f32 %v1193_v12, %v1161_v8  ;;  %v1166_v23 = vmul.f32 %v169_v4, %v169_v4  ;;  %v172_v45 = vld [vmem:[%s3013_s0 + $0x88] sm:$0xff]  ;;  %v202_v44 = vld [vmem:[%s3014_s1 + $0x78] sm:$0xff] }
  0x1f   :  { %v1507_v24 = vsel %vm479_vm0, %v1291_v6, 0.0  ;;  %v507_v25 = vsel %vm479_vm0, %v456_v16, 0.0  ;;  %v1198_v26 = vmul.f32 %v201_v5, %v201_v5  ;;  %v1262_v27 = vmul.f32 %v233_v17, %v233_v17  ;;  %v204_v46 = vld [vmem:[%s3014_s1 + $0x88] sm:$0xff]  ;;  %v235_v6 = vld [vmem:[%s3015_s2 + $0x80] sm:$0xff] }
  0x20   :  { %v1500_v29 = vadd.f32 %v1499_v59, %v1498_v20  ;;  %514 = vadd.xlane.f32.xlu2 %v513_v14  ;;  %v1289_v30 = vadd.f32 %v1257_v13, %v1225_v22  ;;  %v461_v31 = vmul.f32 %v429_v18, %v233_v17  ;;  %v428_v32 = vmul.f32 %v200_v10, %v168_v19  ;;  %v236_v55 = vld [vmem:[%s3015_s2 + $0x88] sm:$0xff]  ;;  %v234_v17 = vld [vmem:[%s3015_s2 + $0x78] sm:$0xff]  ;;  %v207_v22 = vld [vmem:[%s3014_s1 + $0xa0] sm:$0xff] }
  0x21   :  { %v1505_v35 = vsel %vm479_vm0, %v1290_v21, 0.0  ;;  %511 = vadd.xlane.f32.xlu1 %v510_v15  ;;  %v1230_v36 = vadd.f32 %v1198_v26, %v1166_v23  ;;  %v1165_v37 = vmul.f32 %v168_v19, %v168_v19  ;;  %v1197_v38 = vmul.f32 %v200_v10, %v200_v10  ;;  %v175_v21 = vld [vmem:[%s3013_s0 + $0xa0] sm:$0xff] }
  0x22   :  { %v1502_v39 = vadd.f32 %v1501_v49, %v1500_v29  ;;  %v1503_v40 = vsel %vm479_vm0, %v1289_v30, 0.0  ;;  %v460_v41 = vmul.f32 %v428_v32, %v232_v28  ;;  %v1261_v42 = vmul.f32 %v232_v28, %v232_v28 }
  0x23   :  { %508 = vadd.xlane.f32.xlu0 %v507_v25  ;;  %v1294_v47 = vadd.f32 %v1262_v27, %v1230_v36  ;;  %v1229_v50 = vadd.f32 %v1197_v38, %v1165_v37  ;;  %v427_v49 = vmul.f32 %v199_v34, %v167_v33  ;;  %v1164_v51 = vmul.f32 %v167_v33, %v167_v33  ;;  %v174_v36 = vld [vmem:[%s3013_s0 + $0x98] sm:$0xff] }
  0x24   :  { %v1504_v52 = vadd.f32 %v1503_v40, %v1502_v39  ;;  %v522_v48 = vsel %vm479_vm0, %v461_v31, 0.0  ;;  %v1196_v53 = vmul.f32 %v199_v34, %v199_v34  ;;  %v1260_v54 = vmul.f32 %v231_v43, %v231_v43  ;;  %v239_v31 = vld [vmem:[%s3015_s2 + $0xa0] sm:$0xff]  ;;  %v206_v37 = vld [vmem:[%s3014_s1 + $0x98] sm:$0xff] }
  0x25   :  { %v519_v56 = vsel %vm479_vm0, %v460_v41, 0.0  ;;  %v1293_v57 = vadd.f32 %v1261_v42, %v1229_v50  ;;  %v459_v58 = vmul.f32 %v427_v49, %v231_v43  ;;  %v432_v59 = vmul.f32 %v204_v46, %v172_v45  ;;  %v173_v42 = vld [vmem:[%s3013_s0 + $0x90] sm:$0xff]  ;;  %v238_v49 = vld [vmem:[%s3015_s2 + $0x98] sm:$0xff] }
  0x26   :  { %v1506_v62 = vadd.f32 %v1505_v35, %v1504_v52  ;;  %v1228_v63 = vadd.f32 %v1196_v53, %v1164_v51  ;;  %v1169_v0 = vmul.f32 %v172_v45, %v172_v45  ;;  %v1201_v1 = vmul.f32 %v204_v46, %v204_v46  ;;  %v205_v43 = vld [vmem:[%s3014_s1 + $0x90] sm:$0xff] }
  0x27   :  { %v1513_v2 = vsel %vm479_vm0, %v1294_v47, 0.0  ;;  %v516_v3 = vsel %vm479_vm0, %v459_v58, 0.0  ;;  %v464_v4 = vmul.f32 %v432_v59, %v236_v55  ;;  %v1265_v5 = vmul.f32 %v236_v55, %v236_v55 }
  0x28   :  { %523 = vadd.xlane.f32.xlu2 %v522_v48  ;;  %v1292_v8 = vadd.f32 %v1260_v54, %v1228_v63  ;;  %v1508_v9 = vadd.f32 %v1507_v24, %v1506_v62  ;;  %v1233_v11 = vadd.f32 %v1201_v1, %v1169_v0  ;;  %v431_v12 = vmul.f32 %v203_v61, %v171_v60  ;;  %v237_v54 = vld [vmem:[%s3015_s2 + $0x90] sm:$0xff]  ;;  %v178_v63 = vld [vmem:[%s3013_s0 + $0xb8] sm:$0xff] }
  0x29   :  { %v1511_v13 = vsel %vm479_vm0, %v1293_v57, 0.0  ;;  %520 = vadd.xlane.f32.xlu1 %v519_v56  ;;  %v1168_v14 = vmul.f32 %v171_v60, %v171_v60  ;;  %v1200_v15 = vmul.f32 %v203_v61, %v203_v61  ;;  %v1264_v16 = vmul.f32 %v235_v6, %v235_v6  ;;  %v210_v0 = vld [vmem:[%s3014_s1 + $0xb8] sm:$0xff] }
  0x2a   :  { %v1509_v18 = vsel %vm479_vm0, %v1292_v8, 0.0  ;;  %v1297_v19 = vadd.f32 %v1265_v5, %v1233_v11  ;;  %v463_v10 = vmul.f32 %v431_v12, %v235_v6  ;;  %v430_v20 = vmul.f32 %v202_v44, %v170_v7  ;;  %v177_v8 = vld [vmem:[%s3013_s0 + $0xb0] sm:$0xff] }
  0x2b   :  { %517 = vadd.xlane.f32.xlu0 %v516_v3  ;;  %v1510_v23 = vadd.f32 %v1509_v18, %v1508_v9  ;;  %v1232_v24 = vadd.f32 %v1200_v15, %v1168_v14  ;;  %v1167_v25 = vmul.f32 %v170_v7, %v170_v7  ;;  %v1199_v26 = vmul.f32 %v202_v44, %v202_v44  ;;  %v242_v44 = vld [vmem:[%s3015_s2 + $0xb8] sm:$0xff]  ;;  %v209_v9 = vld [vmem:[%s3014_s1 + $0xb0] sm:$0xff]  ;;  %v176_v15 = vld [vmem:[%s3013_s0 + $0xa8] sm:$0xff] }
  0x2c   :  { %v531_v27 = vsel %vm479_vm0, %v464_v4, 0.0  ;;  %v1519_v28 = vsel %vm479_vm0, %v1297_v19, 0.0  ;;  %v462_v29 = vmul.f32 %v430_v20, %v234_v17  ;;  %v1263_v30 = vmul.f32 %v234_v17, %v234_v17  ;;  %v241_v20 = vld [vmem:[%s3015_s2 + $0xb0] sm:$0xff] }
  0x2d   :  { %v1512_v32 = vadd.f32 %v1511_v13, %v1510_v23  ;;  %v1296_v33 = vadd.f32 %v1264_v16, %v1232_v24  ;;  %v1231_v34 = vadd.f32 %v1199_v26, %v1167_v25  ;;  %v435_v35 = vmul.f32 %v207_v22, %v175_v21  ;;  %v208_v16 = vld [vmem:[%s3014_s1 + $0xa8] sm:$0xff] }
  0x2e   :  { %v528_v38 = vsel %vm479_vm0, %v463_v10, 0.0  ;;  %v1172_v39 = vmul.f32 %v175_v21, %v175_v21  ;;  %v1204_v40 = vmul.f32 %v207_v22, %v207_v22  ;;  %v1268_v41 = vmul.f32 %v239_v31, %v239_v31  ;;  %v240_v25 = vld [vmem:[%s3015_s2 + $0xa8] sm:$0xff] }
  0x2f   :  { %v525_v45 = vsel %vm479_vm0, %v462_v29, 0.0  ;;  %v1295_v46 = vadd.f32 %v1263_v30, %v1231_v34  ;;  %v1514_v47 = vadd.f32 %v1513_v2, %v1512_v32  ;;  %v467_v50 = vmul.f32 %v435_v35, %v239_v31  ;;  %v213_v31 = vld [vmem:[%s3014_s1 + $0xd0] sm:$0xff] }
  0x30   :  { %532 = vadd.xlane.f32.xlu2 %v531_v27  ;;  %v1236_v51 = vadd.f32 %v1204_v40, %v1172_v39  ;;  %v434_v52 = vmul.f32 %v206_v37, %v174_v36  ;;  %v1171_v48 = vmul.f32 %v174_v36, %v174_v36  ;;  %v1203_v53 = vmul.f32 %v206_v37, %v206_v37 }
  0x31   :  { %v1517_v55 = vsel %vm479_vm0, %v1296_v33, 0.0  ;;  %529 = vadd.xlane.f32.xlu1 %v528_v38  ;;  %v1515_v56 = vsel %vm479_vm0, %v1295_v46, 0.0  ;;  %v1267_v57 = vmul.f32 %v238_v49, %v238_v49  ;;  %v433_v58 = vmul.f32 %v205_v43, %v173_v42  ;;  %v180_v46 = vld [vmem:[%s3013_s0 + $0xc8] sm:$0xff] }
  0x32   :  { %v1516_v59 = vadd.f32 %v1515_v56, %v1514_v47  ;;  %v1300_v60 = vadd.f32 %v1268_v41, %v1236_v51  ;;  %v466_v61 = vmul.f32 %v434_v52, %v238_v49  ;;  %v1235_v62 = vadd.f32 %v1203_v53, %v1171_v48  ;;  %v212_v47 = vld [vmem:[%s3014_s1 + $0xc8] sm:$0xff] }
  0x33   :  { %526 = vadd.xlane.f32.xlu0 %v525_v45  ;;  %v465_v1 = vmul.f32 %v433_v58, %v237_v54  ;;  %v1170_v2 = vmul.f32 %v173_v42, %v173_v42  ;;  %v1202_v3 = vmul.f32 %v205_v43, %v205_v43  ;;  %v1266_v4 = vmul.f32 %v237_v54, %v237_v54  ;;  %v245_v43 = vld [vmem:[%s3015_s2 + $0xd0] sm:$0xff]  ;;  %v244_v56 = vld [vmem:[%s3015_s2 + $0xc8] sm:$0xff]  ;;  %v211_v58 = vld [vmem:[%s3014_s1 + $0xc0] sm:$0xff] }
  0x34   :  { %v1518_v5 = vadd.f32 %v1517_v55, %v1516_v59  ;;  %v540_v6 = vsel %vm479_vm0, %v467_v50, 0.0  ;;  %v1299_v7 = vadd.f32 %v1267_v57, %v1235_v62  ;;  %v537_v11 = vsel %vm479_vm0, %v466_v61, 0.0  ;;  %v179_v57 = vld [vmem:[%s3013_s0 + $0xc0] sm:$0xff] }
  0x35   :  { %v1234_v12 = vadd.f32 %v1202_v3, %v1170_v2  ;;  %v438_v13 = vmul.f32 %v210_v0, %v178_v63  ;;  %v1175_v14 = vmul.f32 %v178_v63, %v178_v63  ;;  %v534_v17 = vsel %vm479_vm0, %v465_v1, 0.0  ;;  %v243_v3 = vld [vmem:[%s3015_s2 + $0xc0] sm:$0xff] }
  0x36   :  { %v1520_v18 = vadd.f32 %v1519_v28, %v1518_v5  ;;  %v1207_v19 = vmul.f32 %v210_v0, %v210_v0  ;;  %v1271_v10 = vmul.f32 %v242_v44, %v242_v44  ;;  %v437_v23 = vmul.f32 %v209_v9, %v177_v8  ;;  %v181_v28 = vld [vmem:[%s3013_s0 + $0xd0] sm:$0xff] }
  0x37   :  { %v1298_v21 = vadd.f32 %v1266_v4, %v1234_v12  ;;  %v470_v22 = vmul.f32 %v438_v13, %v242_v44  ;;  %v1174_v24 = vmul.f32 %v177_v8, %v177_v8  ;;  %v1206_v27 = vmul.f32 %v209_v9, %v209_v9  ;;  %v184_v12 = vld [vmem:[%s3013_s0 + $0xe8] sm:$0xff] }
  0x38   :  { %541 = vadd.xlane.f32.xlu2 %v540_v6  ;;  %v1239_v26 = vadd.f32 %v1207_v19, %v1175_v14  ;;  %v1270_v29 = vmul.f32 %v241_v20, %v241_v20  ;;  %v436_v30 = vmul.f32 %v208_v16, %v176_v15  ;;  %v1523_v32 = vsel %vm479_vm0, %v1299_v7, 0.0  ;;  %v216_v13 = vld [vmem:[%s3014_s1 + $0xe8] sm:$0xff] }
  0x39   :  { %538 = vadd.xlane.f32.xlu1 %v537_v11  ;;  %v1521_v33 = vsel %vm479_vm0, %v1298_v21, 0.0  ;;  %v469_v34 = vmul.f32 %v437_v23, %v241_v20  ;;  %v1173_v35 = vmul.f32 %v176_v15, %v176_v15  ;;  %v1238_v38 = vadd.f32 %v1206_v27, %v1174_v24  ;;  %v183_v20 = vld [vmem:[%s3013_s0 + $0xe0] sm:$0xff]  ;;  %v248_v24 = vld [vmem:[%s3015_s2 + $0xe8] sm:$0xff] }
  0x3a   :  { %v1522_v36 = vadd.f32 %v1521_v33, %v1520_v18  ;;  %v1303_v37 = vadd.f32 %v1271_v10, %v1239_v26  ;;  %v468_v39 = vmul.f32 %v436_v30, %v240_v25  ;;  %v1525_v40 = vsel %vm479_vm0, %v1300_v60, 0.0  ;;  %v215_v21 = vld [vmem:[%s3014_s1 + $0xe0] sm:$0xff] }
  0x3b   :  { %535 = vadd.xlane.f32.xlu0 %v534_v17  ;;  %v1205_v41 = vmul.f32 %v208_v16, %v208_v16  ;;  %v1269_v42 = vmul.f32 %v240_v25, %v240_v25  ;;  %v441_v45 = vmul.f32 %v213_v31, %v181_v28  ;;  %v549_v49 = vsel %vm479_vm0, %v470_v22, 0.0 }
  0x3c   :  { %v1524_v50 = vadd.f32 %v1523_v32, %v1522_v36  ;;  %v546_v51 = vsel %vm479_vm0, %v469_v34, 0.0  ;;  %v1302_v52 = vadd.f32 %v1270_v29, %v1238_v38  ;;  %v543_v48 = vsel %vm479_vm0, %v468_v39, 0.0  ;;  %v214_v32 = vld [vmem:[%s3014_s1 + $0xd8] sm:$0xff] }
  0x3d   :  { %v1237_v53 = vadd.f32 %v1205_v41, %v1173_v35  ;;  %v1178_v54 = vmul.f32 %v181_v28, %v181_v28  ;;  %v1210_v55 = vmul.f32 %v213_v31, %v213_v31  ;;  %v473_v60 = vmul.f32 %v441_v45, %v245_v43  ;;  %v182_v31 = vld [vmem:[%s3013_s0 + $0xd8] sm:$0xff] }
  0x3e   :  { %v1526_v59 = vadd.f32 %v1525_v40, %v1524_v50  ;;  %v1274_v61 = vmul.f32 %v245_v43, %v245_v43  ;;  %v440_v62 = vmul.f32 %v212_v47, %v180_v46  ;;  %v1529_v63 = vsel %vm479_vm0, %v1302_v52, 0.0  ;;  %v247_v40 = vld [vmem:[%s3015_s2 + $0xe0] sm:$0xff] }
  0x3f   :  { %v1301_v0 = vadd.f32 %v1269_v42, %v1237_v53  ;;  %v1242_v1 = vadd.f32 %v1210_v55, %v1178_v54  ;;  %v1177_v2 = vmul.f32 %v180_v46, %v180_v46  ;;  %v1209_v5 = vmul.f32 %v212_v47, %v212_v47  ;;  %v246_v46 = vld [vmem:[%s3015_s2 + $0xd8] sm:$0xff] }
  0x40   :  { %550 = vadd.xlane.f32.xlu2 %v549_v49  ;;  %v472_v4 = vmul.f32 %v440_v62, %v244_v56  ;;  %v1273_v6 = vmul.f32 %v244_v56, %v244_v56  ;;  %v439_v7 = vmul.f32 %v211_v58, %v179_v57  ;;  %v1176_v9 = vmul.f32 %v179_v57, %v179_v57 }
  0x41   :  { %547 = vadd.xlane.f32.xlu1 %v546_v51  ;;  %v1527_v44 = vsel %vm479_vm0, %v1301_v0, 0.0  ;;  %v2219_v8 = vadd.f32 %v1274_v61, %v1242_v1  ;;  %v1208_v11 = vmul.f32 %v211_v58, %v211_v58  ;;  %v1241_v15 = vadd.f32 %v1209_v5, %v1177_v2  ;;  %v186_v58 = vld [vmem:[%s3013_s0 + $0xf8] sm:$0xff]  ;;  %v217_v61 = vld [vmem:[%s3014_s1 + $0xf0] sm:$0xff] }
  0x42   :  { %v1528_v14 = vadd.f32 %v1527_v44, %v1526_v59  ;;  %v471_v16 = vmul.f32 %v439_v7, %v243_v3  ;;  %v1531_v17 = vsel %vm479_vm0, %v1303_v37, 0.0  ;;  %v558_v18 = vsel %vm479_vm0, %v473_v60, 0.0  ;;  %v218_v59 = vld [vmem:[%s3014_s1 + $0xf8] sm:$0xff]  ;;  %v185_v60 = vld [vmem:[%s3013_s0 + $0xf0] sm:$0xff] }
  0x43   :  { %544 = vadd.xlane.f32.xlu0 %v543_v48  ;;  %v1240_v19 = vadd.f32 %v1208_v11, %v1176_v9  ;;  %v1272_v10 = vmul.f32 %v243_v3, %v243_v3  ;;  %v1305_v23 = vadd.f32 %v1273_v6, %v1241_v15  ;;  %v444_v25 = vmul.f32 %v216_v13, %v184_v12  ;;  %v250_v3 = vld [vmem:[%s3015_s2 + $0xf8] sm:$0xff]  ;;  %v249_v5 = vld [vmem:[%s3015_s2 + $0xf0] sm:$0xff] }
  0x44   :  { %v1530_v22 = vadd.f32 %v1529_v63, %v1528_v14  ;;  %v1181_v26 = vmul.f32 %v184_v12, %v184_v12  ;;  %v555_v27 = vsel %vm479_vm0, %v472_v4, 0.0  ;;  %v1213_v30 = vmul.f32 %v216_v13, %v216_v13 }
  0x45   :  { %v1304_v29 = vadd.f32 %v1272_v10, %v1240_v19  ;;  %v1277_v28 = vmul.f32 %v248_v24, %v248_v24  ;;  %v552_v33 = vsel %vm479_vm0, %v471_v16, 0.0  ;;  %v443_v35 = vmul.f32 %v215_v21, %v183_v20 }
  0x46   :  { %v1532_v34 = vadd.f32 %v1531_v17, %v1530_v22  ;;  %v1180_v36 = vmul.f32 %v183_v20, %v183_v20  ;;  %v1535_v37 = vsel %vm479_vm0, %v1305_v23, 0.0  ;;  %v1245_v39 = vadd.f32 %v1213_v30, %v1181_v26  ;;  %v2306_v30 = vld [vmem:[%s3016_s3] sm:$0xff]  }
  0x47   :  { %v1533_v38 = vsel %vm479_vm0, %v1304_v29, 0.0  ;;  %v1212_v41 = vmul.f32 %v215_v21, %v215_v21  ;;  %v476_v43 = vmul.f32 %v444_v25, %v248_v24  ;;  %v1276_v45 = vmul.f32 %v247_v40, %v247_v40  ;;  %v1691_v24 = vld [vmem:[%s3016_s3 + $0x10] sm:$0xff]   ;;  %v1690_v29 = vld [vmem:[%s3016_s3 + $0x8] sm:$0xff]  }
  0x48   :  { %559 = vadd.xlane.f32.xlu2 %v558_v18  ;;  %v1534_v42 = vadd.f32 %v1533_v38, %v1532_v34  ;;  %v442_v47 = vmul.f32 %v214_v32, %v182_v31  ;;  %v2254_v50 = vadd.f32 %v1277_v28, %v1245_v39  ;;  %v1179_v51 = vmul.f32 %v182_v31, %v182_v31 }
  0x49   :  { %556 = vadd.xlane.f32.xlu1 %v555_v27  ;;  %v1244_v49 = vadd.f32 %v1212_v41, %v1180_v36  ;;  %v1211_v52 = vmul.f32 %v214_v32, %v214_v32  ;;  %v475_v53 = vmul.f32 %v443_v35, %v247_v40  ;;  %v1275_v54 = vmul.f32 %v246_v46, %v246_v46 }
  0x4a   :  { %v2256_v48 = vadd.f32 %v1535_v37, %v1534_v42  ;;  %v474_v56 = vmul.f32 %v442_v47, %v246_v46  ;;  %v567_v62 = vsel %vm479_vm0, %v476_v43, 0.0  ;;  %v446_v1 = vmul.f32 %v218_v59, %v186_v58 }
  0x4b   :  { %553 = vadd.xlane.f32.xlu0 %v552_v33  ;;  %v2258_v55 = vadd.f32 %v1276_v45, %v1244_v49  ;;  %v1243_v57 = vadd.f32 %v1211_v52, %v1179_v51  ;;  %v564_v0 = vsel %vm479_vm0, %v475_v53, 0.0  ;;  %v445_v4 = vmul.f32 %v217_v61, %v185_v60  ;;  %v2333_v52 = vld [vmem:[%s3016_s3 + $0x20] sm:$0xff]   ;;  %v2338_v53 = vld [vmem:[%s3016_s3 + $0x18] sm:$0xff]  }
  0x4c   :  { %v561_v2 = vsel %vm479_vm0, %v474_v56, 0.0  ;;  %v478_v6 = vmul.f32 %v446_v1, %v250_v3  ;;  %v2311_v33 = vsel %vm479_vm0, %v2219_v8, 0.0  ;;  %v1636_v34 = vunpack.c.l.bf16 %v1691_v24 }
  0x4d   :  { %v1307_v63 = vadd.f32 %v1275_v54, %v1243_v57  ;;  %v477_v7 = vmul.f32 %v445_v4, %v249_v5  ;;  %v2313_v35 = vmul.f32 %v186_v58, %v186_v58  ;;  %v1632_v36 = vunpack.c.l.bf16 %v1690_v29 }
  0x4e   :  { %v573_v44 = vsel %vm479_vm0, %v478_v6, 0.0  ;;  %v1628_v37 = vunpack.c.l.bf16 %v2306_v30  ;;  %v2316_v38 = vmul.f32 %v218_v59, %v218_v59  ;;  %v2318_v39 = vmul.f32 %v250_v3, %v250_v3 }
  0x4f   :  { %v570_v9 = vsel %vm479_vm0, %v477_v7, 0.0  ;;  %v2320_v40 = vmul.f32 %v185_v60, %v185_v60  ;;  %v2322_v42 = vmul.f32 %v217_v61, %v217_v61  ;;  %v2324_v43 = vmul.f32 %v249_v5, %v249_v5 }
  0x50   :  { %568 = vadd.xlane.f32.xlu2 %v567_v62  ;;  %v2327_v46 = vsel %vm479_vm0, %v1307_v63, 0.0  ;;  %v1629_v51 = vunpack.c.h.bf16 %v2306_v30  ;;  %v1637_v61 = vunpack.c.h.bf16 %v1691_v24  ;;  %v1633_v62 = vunpack.c.h.bf16 %v1690_v29  ;;  %v2373_v29 = vld [vmem:[%s3016_s3 + $0x28] sm:$0xff]  }
  0x51   :  { %565 = vadd.xlane.f32.xlu1 %v564_v0  ;;  %v1641_v3 = vunpack.c.h.bf16 %v2338_v53  ;;  %v1640_v4 = vunpack.c.l.bf16 %v2338_v53  ;;  %vm1409_vm4 = vcmask 7168  }
  0x53   :  { %562 = vadd.xlane.f32.xlu0 %v561_v2  ;;  %v1644_v2 = vunpack.c.l.bf16 %v2333_v52 }
  0x59   :  { %574 = vadd.xlane.f32.xlu1 %v573_v44 }
  0x5b   :  { %571 = vadd.xlane.f32.xlu0 %v570_v9 }
  0x7b   :  { %v494_v11 = vpop.xlane.xlu2 %493  ;;  %v2283_v13 = vpop.xlane.xlu1 %487 }
  0x7c   :  { %v676_v12 = vand.u32 2147483647, %v494_v11  ;;  %v674_v14 = vand.u32 2147483647, %v2283_v13  ;;  %v580_v47 = vmax.f32 %v494_v11, 0.0  ;;  %v612_v49 = vmul.f32 %v1636_v34, %v494_v11 }
  0x7d   :  { %v578_v56 = vmax.f32 %v2283_v13, 0.0  ;;  %v610_v57 = vmul.f32 %v1632_v36, %v2283_v13 }
  0x7e   :  { %v2286_v15 = vpop.xlane.xlu0 %481  ;;  %v708_v16 = vsub.f32 0.0, %v676_v12  ;;  %v706_v18 = vsub.f32 0.0, %v674_v14  ;;  %v2351_v5 = vsub.f32 %v580_v47, %v612_v49 }
  0x7f   :  { %v672_v17 = vand.u32 2147483647, %v2286_v15  ;;  %v576_v58 = vmax.f32 %v2286_v15, 0.0  ;;  %v608_v59 = vmul.f32 %v1628_v37, %v2286_v15  ;;  %v2353_v44 = vsub.f32 %v578_v56, %v610_v57 }
  0x80   :  { %v744_v10 = vmul.f32 1.442695, %v708_v16  ;;  %v740_v21 = vmul.f32 1.442695, %v706_v18 }
  0x81   :  { %v704_v19 = vsub.f32 0.0, %v672_v17  ;;  %v2355_v11 = vsub.f32 %v576_v58, %v608_v59  ;;  %v1645_v17 = vunpack.c.h.bf16 %v2333_v52 }
  0x82   :  { %1711 = vpow2.f32 %v744_v10 }
  0x83   :  { %v2289_v20 = vpop.xlane.xlu2 %496  ;;  %v2292_v23 = vpop.xlane.xlu1 %490  ;;  %v736_v25 = vmul.f32 1.442695, %v704_v19  ;;  %1713 = vpow2.f32 %v740_v21 }
  0x84   :  { %v677_v22 = vand.u32 2147483647, %v2289_v20  ;;  %v675_v26 = vand.u32 2147483647, %v2292_v23  ;;  %v581_v15 = vmax.f32 %v2289_v20, 0.0  ;;  %v613_v18 = vmul.f32 %v1637_v61, %v2289_v20 }
  0x85   :  { %1715 = vpow2.f32 %v736_v25  ;;  %v579_v19 = vmax.f32 %v2292_v23, 0.0  ;;  %v611_v10 = vmul.f32 %v1633_v62, %v2292_v23 }
  0x86   :  { %v2298_v27 = vpop.xlane.xlu0 %484  ;;  %v709_v28 = vsub.f32 0.0, %v677_v22  ;;  %v707_v31 = vsub.f32 0.0, %v675_v26 }
  0x87   :  { %v673_v32 = vand.u32 2147483647, %v2298_v27  ;;  %v577_v21 = vmax.f32 %v2298_v27, 0.0  ;;  %v609_v26 = vmul.f32 %v1629_v51, %v2298_v27  ;;  %v2380_v27 = vsub.f32 %v581_v15, %v613_v18 }
  0x88   :  { %v746_v41 = vmul.f32 1.442695, %v709_v28  ;;  %v742_v8 = vmul.f32 1.442695, %v707_v31  ;;  %v1712_v54 = vpop.eup %1711  ;;  %v2382_v37 = vsub.f32 %v579_v19, %v611_v10 }
  0x89   :  { %v705_v45 = vsub.f32 0.0, %v673_v32  ;;  %v1714_v60 = vpop.eup %1713  ;;  %v836_v6 = vadd.f32 1.0, %v1712_v54  ;;  %v839_v7 = vmul.f32 -0.5, %v1712_v54  ;;  %v842_v25 = vand.u32 2147483647, %v1712_v54 }
  0x8a   :  { %1717 = vpow2.f32 %v746_v41  ;;  %v818_v9 = vadd.f32 1.0, %v1714_v60  ;;  %v821_v13 = vmul.f32 -0.5, %v1714_v60  ;;  %v824_v20 = vand.u32 2147483647, %v1714_v60 }
  0x8b   :  { %v738_v63 = vmul.f32 1.442695, %v705_v45  ;;  %v2344_v0 = vpop.xlane.xlu2 %505  ;;  %v2346_v1 = vpop.eup %1715  ;;  %1719 = vpow2.f32 %v742_v8  ;;  %v840_v24 = vadd.f32 1.0, %v839_v7  ;;  %v1648_v8 = vunpack.c.l.bf16 %v2373_v29 }
  0x8c   :  { %v680_v12 = vand.u32 2147483647, %v2344_v0  ;;  %v800_v14 = vadd.f32 1.0, %v2346_v1  ;;  %v2360_v16 = vpop.xlane.xlu1 %502  ;;  %v822_v32 = vadd.f32 1.0, %v821_v13  ;;  %v803_v34 = vmul.f32 -0.5, %v2346_v1 }
  0x8d   :  { %1721 = vpow2.f32 %v738_v63  ;;  %v679_v23 = vand.u32 2147483647, %v2360_v16  ;;  %v806_v36 = vand.u32 2147483647, %v2346_v1  ;;  %v2385_v45 = vmul.f32 %v1712_v54, %v840_v24 }
  0x8e   :  { %1723 = vlog2.f32 %v836_v6  ;;  %v712_v28 = vsub.f32 0.0, %v680_v12  ;;  %v641_v49 = vsub.f32 %v577_v21, %v609_v26  ;;  %vm2388_vm1 = vcmp.lt.f32.partialorder %v842_v25, 0.0004427343  ;;  %v2397_v62 = vpop.xlane.xlu0 %499 }
  0x8f   :  { %1725 = vlog2.f32 %v818_v9  ;;  %vm2392_vm2 = vcmp.lt.f32.partialorder %v824_v20, 0.0004427343  ;;  %v711_v61 = vsub.f32 0.0, %v679_v23  ;;  %v823_v63 = vmul.f32 %v1714_v60, %v822_v32 }
  0x90   :  { %v2367_v22 = vpop.eup %1717  ;;  %1727 = vlog2.f32 %v800_v14  ;;  %v752_v59 = vmul.f32 1.442695, %v712_v28  ;;  %v804_v6 = vadd.f32 1.0, %v803_v34  ;;  %vm2399_vm3 = vcmp.lt.f32.partialorder %v806_v36, 0.0004427343 }
  0x91   :  { %v2375_v30 = vpop.eup %1719  ;;  %v845_v47 = vadd.f32 1.0, %v2367_v22  ;;  %v584_v9 = vmax.f32 %v2344_v0, 0.0  ;;  %v616_v13 = vmul.f32 %v1644_v2, %v2344_v0  ;;  %v583_v14 = vmax.f32 %v2360_v16, 0.0 }
  0x92   :  { %v827_v58 = vadd.f32 1.0, %v2375_v30  ;;  %v750_v15 = vmul.f32 1.442695, %v711_v61  ;;  %v615_v60 = vmul.f32 %v1641_v3, %v2360_v16  ;;  %v678_v21 = vand.u32 2147483647, %v2397_v62 }
  0x93   :  { %v1722_v31 = vpop.eup %1721  ;;  %v2406_v18 = vpop.xlane.xlu2 %514  ;;  %v848_v25 = vmul.f32 -0.5, %v2367_v22  ;;  %v805_v34 = vmul.f32 %v2346_v1, %v804_v6  ;;  %v851_v3 = vand.u32 2147483647, %v2367_v22  ;;  %v830_v16 = vmul.f32 -0.5, %v2375_v30 }
  0x94   :  { %v809_v41 = vadd.f32 1.0, %v1722_v31  ;;  %v812_v51 = vmul.f32 -0.5, %v1722_v31  ;;  %v1724_v54 = vpop.eup %1723  ;;  %v815_v0 = vand.u32 2147483647, %v1722_v31  ;;  %v2413_v2 = vpop.xlane.xlu1 %511  ;;  %v710_v20 = vsub.f32 0.0, %v678_v21 }
  0x95   :  { %v1726_v12 = vpop.eup %1725  ;;  %v838_v24 = vmul.f32 0.6931472, %v1724_v54  ;;  %v683_v28 = vand.u32 2147483647, %v2406_v18  ;;  %v2422_v61 = vsub.f32 %v584_v9, %v616_v13  ;;  %v831_v21 = vadd.f32 1.0, %v830_v16 }
  0x96   :  { %1729 = vlog2.f32 %v809_v41  ;;  %v1728_v19 = vpop.eup %1727  ;;  %v813_v10 = vadd.f32 1.0, %v812_v51  ;;  %v820_v26 = vmul.f32 0.6931472, %v1726_v12  ;;  %v682_v51 = vand.u32 2147483647, %v2413_v2  ;;  %v2437_v57 = vpop.xlane.xlu0 %508 }
  0x97   :  { %1731 = vpow2.f32 %v752_v59  ;;  %v802_v32 = vmul.f32 0.6931472, %v1728_v19  ;;  %v849_v59 = vadd.f32 1.0, %v848_v25  ;;  %vm816_vm5 = vcmp.lt.f32.partialorder %v815_v0, 0.0004427343 }
  0x98   :  { %1733 = vlog2.f32 %v845_v47  ;;  %v814_v41 = vmul.f32 %v1722_v31, %v813_v10  ;;  %v748_v47 = vmul.f32 1.442695, %v710_v20  ;;  %v715_v54 = vsub.f32 0.0, %v683_v28 }
  0x99   :  { %1735 = vlog2.f32 %v827_v58  ;;  %v844_v1 = vsel %vm2388_vm1, %v2385_v45, %v838_v24  ;;  %v826_v6 = vsel %vm2392_vm2, %v823_v63, %v820_v26  ;;  %v833_v31 = vand.u32 2147483647, %v2375_v30 }
  0x9a   :  { %1737 = vpow2.f32 %v750_v15  ;;  %v808_v10 = vsel %vm2399_vm3, %v805_v34, %v802_v32  ;;  %v2435_v0 = vsub.f32 %v583_v14, %v615_v60  ;;  %v758_v45 = vmul.f32 1.442695, %v715_v54 }
  0x9b   :  { %1739 = vpow2.f32 %v748_v47  ;;  %v714_v56 = vsub.f32 0.0, %v682_v51  ;;  %v1092_v63 = vadd.f32 %v844_v1, %v2351_v5  ;;  %v850_v26 = vmul.f32 %v2367_v22, %v849_v59  ;;  %v2456_v34 = vpop.xlane.xlu2 %523 }
  0x9c   :  { %v1730_v23 = vpop.eup %1729  ;;  %vm2441_vm6 = vcmp.lt.f32.partialorder %v851_v3, 0.0004427343  ;;  %v1090_v20 = vadd.f32 %v826_v6, %v2353_v44  ;;  %v1088_v28 = vadd.f32 %v808_v10, %v2355_v11  ;;  %vm2447_vm7 = vcmp.lt.f32.partialorder %v833_v31, 0.0004427343 }
  0x9d   :  { %v811_v36 = vmul.f32 0.6931472, %v1730_v23  ;;  %v2420_v58 = vpop.eup %1731  ;;  %v832_v60 = vmul.f32 %v2375_v30, %v831_v21  ;;  %v681_v22 = vand.u32 2147483647, %v2437_v57  ;;  %v582_v32 = vmax.f32 %v2397_v62, 0.0 }
  0x9e   :  { %v1734_v12 = vpop.eup %1733  ;;  %v872_v9 = vadd.f32 1.0, %v2420_v58  ;;  %v756_v44 = vmul.f32 1.442695, %v714_v56  ;;  %v614_v30 = vmul.f32 %v1640_v4, %v2397_v62  ;;  %v1649_v16 = vunpack.c.h.bf16 %v2373_v29 }
  0x9f   :  { %v817_v15 = vsel %vm816_vm5, %v814_v41, %v811_v36  ;;  %v1736_v19 = vpop.eup %1735  ;;  %v847_v24 = vmul.f32 0.6931472, %v1734_v12  ;;  %v713_v36 = vsub.f32 0.0, %v681_v22  ;;  %v1417_v41 = vsel %vm1409_vm4, %v1092_v63, 0.0 }
  0xa0   :  { %v2433_v13 = vpop.eup %1737  ;;  %v1089_v25 = vadd.f32 %v817_v15, %v641_v49  ;;  %v829_v49 = vmul.f32 0.6931472, %v1736_v19  ;;  %1741 = vlog2.f32 %v872_v9  ;;  %v1410_v47 = vsel %vm1409_vm4, %v1088_v28, 0.0 }
  0xa1   :  { %v863_v5 = vadd.f32 1.0, %v2433_v13  ;;  %1743 = vpow2.f32 %v758_v45  ;;  %v2458_v11 = vpop.eup %1739  ;;  %v853_v3 = vsel %vm2441_vm6, %v850_v26, %v847_v24  ;;  %v875_v59 = vmul.f32 -0.5, %v2420_v58 }
  0xa2   :  { %v1411_v23 = vsel %vm1409_vm4, %v1089_v25, 0.0  ;;  %v835_v51 = vsel %vm2447_vm7, %v832_v60, %v829_v49  ;;  %v854_v12 = vadd.f32 1.0, %v2458_v11  ;;  %v686_v1 = vand.u32 2147483647, %v2456_v34 }
  0xa3   :  { %v1412_v54 = vadd.f32 %v1411_v23, %v1410_v47  ;;  %1745 = vlog2.f32 %v863_v5  ;;  %v1413_v53 = vsel %vm1409_vm4, %v1090_v20, 0.0  ;;  %v1093_v4 = vadd.f32 %v853_v3, %v2380_v27  ;;  %v2500_v5 = vpop.xlane.xlu1 %520 }
  0xa4   :  { %v587_v62 = vmax.f32 %v2406_v18, 0.0  ;;  %1747 = vpow2.f32 %v756_v44  ;;  %v2476_v31 = vsub.f32 %v582_v32, %v614_v30  ;;  %v619_v15 = vmul.f32 %v1649_v16, %v2406_v18  ;;  %v2510_v44 = vpop.xlane.xlu0 %517 }
  0xa5   :  { %v586_v19 = vmax.f32 %v2413_v2, 0.0  ;;  %v754_v10 = vmul.f32 1.442695, %v713_v36  ;;  %v1091_v9 = vadd.f32 %v835_v51, %v2382_v37  ;;  %v876_v25 = vadd.f32 1.0, %v875_v59  ;;  %v2494_v37 = vld [vmem:[%s3016_s3 + $0x38] sm:$0xff]  }
  0xa6   :  { %v1742_v6 = vpop.eup %1741  ;;  %v878_v45 = vand.u32 2147483647, %v2420_v58  ;;  %v866_v27 = vmul.f32 -0.5, %v2433_v13  ;;  %v1414_v56 = vadd.f32 %v1413_v53, %v1412_v54  ;;  %v869_v63 = vand.u32 2147483647, %v2433_v13 }
  0xa7   :  { %v2480_v21 = vpop.eup %1743  ;;  %1749 = vlog2.f32 %v854_v12  ;;  %v718_v24 = vsub.f32 0.0, %v686_v1  ;;  %v1419_v26 = vsel %vm1409_vm4, %v1093_v4, 0.0  ;;  %v874_v18 = vmul.f32 0.6931472, %v1742_v6 }
  0xa8   :  { %v857_v7 = vmul.f32 -0.5, %v2458_v11  ;;  %v618_v20 = vmul.f32 %v1648_v8, %v2413_v2  ;;  %v2496_v49 = vsub.f32 %v587_v62, %v619_v15  ;;  %v899_v14 = vadd.f32 1.0, %v2480_v21 }
  0xa9   :  { %v1746_v28 = vpop.eup %1745  ;;  %v585_v60 = vmax.f32 %v2437_v57, 0.0  ;;  %1751 = vpow2.f32 %v754_v10  ;;  %v1415_v29 = vsel %vm1409_vm4, %v1091_v9, 0.0  ;;  %v877_v8 = vmul.f32 %v2420_v58, %v876_v25 }
  0xaa   :  { %v2502_v22 = vpop.eup %1747  ;;  %vm2506_vm8 = vcmp.lt.f32.partialorder %v878_v45, 0.0004427343  ;;  %v867_v32 = vadd.f32 1.0, %v866_v27  ;;  %v1416_v3 = vadd.f32 %v1415_v29, %v1414_v56  ;;  %vm2512_vm9 = vcmp.lt.f32.partialorder %v869_v63, 0.0004427343 }
  0xab   :  { %v1656_v16 = vunpack.c.l.bf16 %v2494_v37  ;;  %v764_v36 = vmul.f32 1.442695, %v718_v24  ;;  %v880_v47 = vsel %vm2506_vm8, %v877_v8, %v874_v18  ;;  %v858_v51 = vadd.f32 1.0, %v857_v7 }
  0xac   :  { %v617_v58 = vmul.f32 %v1645_v17, %v2437_v57  ;;  %v685_v59 = vand.u32 2147483647, %v2500_v5  ;;  %v865_v12 = vmul.f32 0.6931472, %v1746_v28  ;;  %1753 = vlog2.f32 %v899_v14 }
  0xad   :  { %v1750_v54 = vpop.eup %1749  ;;  %v890_v1 = vadd.f32 1.0, %v2502_v22  ;;  %v684_v53 = vand.u32 2147483647, %v2510_v44  ;;  %v868_v4 = vmul.f32 %v2433_v13, %v867_v32  ;;  %v902_v62 = vmul.f32 -0.5, %v2480_v21  ;;  %v2560_v32 = vpop.xlane.xlu2 %532 }
  0xae   :  { %v590_v6 = vmax.f32 %v2456_v34, 0.0  ;;  %v717_v15 = vsub.f32 0.0, %v685_v59  ;;  %v1418_v52 = vadd.f32 %v1417_v41, %v1416_v3  ;;  %v860_v17 = vand.u32 2147483647, %v2458_v11  ;;  %v2569_v3 = vpop.xlane.xlu1 %529 }
  0xaf   :  { %v2528_v10 = vpop.eup %1751  ;;  %v622_v57 = vmul.f32 %v1656_v16, %v2456_v34  ;;  %1755 = vpow2.f32 %v764_v36  ;;  %v1096_v9 = vadd.f32 %v880_v47, %v2422_v61  ;;  %v856_v25 = vmul.f32 0.6931472, %v1750_v54 }
  0xb0   :  { %v859_v45 = vmul.f32 %v2458_v11, %v858_v51  ;;  %v881_v13 = vadd.f32 1.0, %v2528_v10  ;;  %v871_v27 = vsel %vm2512_vm9, %v868_v4, %v865_v12  ;;  %v905_v56 = vand.u32 2147483647, %v2480_v21 }
  0xb1   :  { %1757 = vlog2.f32 %v890_v1  ;;  %v716_v63 = vsub.f32 0.0, %v684_v53  ;;  %v903_v41 = vadd.f32 1.0, %v902_v62  ;;  %v893_v24 = vmul.f32 -0.5, %v2502_v22 }
  0xb2   :  { %1759 = vlog2.f32 %v881_v13  ;;  %v762_v34 = vmul.f32 1.442695, %v717_v15  ;;  %v1754_v18 = vpop.eup %1753  ;;  %v1420_v7 = vadd.f32 %v1419_v26, %v1418_v52  ;;  %vm2539_vm10 = vcmp.lt.f32.partialorder %v860_v17, 0.0004427343  ;;  %v1695_v26 = vld [vmem:[%s3016_s3 + $0x30] sm:$0xff]  }
  0xb3   :  { %v2545_v11 = vsub.f32 %v586_v19, %v618_v20  ;;  %v2547_v28 = vsub.f32 %v585_v60, %v617_v58  ;;  %v2550_v14 = vsel %vm1409_vm4, %v1096_v9, 0.0  ;;  %v1095_v29 = vadd.f32 %v871_v27, %v2435_v0  ;;  %v2584_v9 = vpop.xlane.xlu0 %526 }
  0xb4   :  { %v862_v8 = vsel %vm2539_vm10, %v859_v45, %v856_v25  ;;  %v2555_v23 = vsub.f32 %v590_v6, %v622_v57  ;;  %vm2564_vm11 = vcmp.lt.f32.partialorder %v905_v56, 0.0004427343  ;;  %v884_v20 = vmul.f32 -0.5, %v2528_v10 }
  0xb5   :  { %v2562_v2 = vpop.eup %1755  ;;  %v1653_v0 = vunpack.c.h.bf16 %v1695_v26  ;;  %v760_v60 = vmul.f32 1.442695, %v716_v63  ;;  %v901_v30 = vmul.f32 0.6931472, %v1754_v18  ;;  %v904_v16 = vmul.f32 %v2480_v21, %v903_v41  ;;  %v1697_v18 = vld [vmem:[%s3016_s3 + $0x40] sm:$0xff]  }
  0xb6   :  { %v894_v36 = vadd.f32 1.0, %v893_v24  ;;  %1761 = vpow2.f32 %v762_v34  ;;  %v1094_v51 = vadd.f32 %v862_v8, %v2476_v31  ;;  %v896_v58 = vand.u32 2147483647, %v2502_v22 }
  0xb7   :  { %v1758_v47 = vpop.eup %1757  ;;  %1763 = vpow2.f32 %v760_v60  ;;  %v689_v59 = vand.u32 2147483647, %v2560_v32  ;;  %v1423_v12 = vsel %vm1409_vm4, %v1095_v29, 0.0  ;;  %v926_v1 = vadd.f32 1.0, %v2562_v2 }
  0xb8   :  { %v1760_v54 = vpop.eup %1759  ;;  %v1652_v53 = vunpack.c.l.bf16 %v1695_v26  ;;  %v688_v4 = vand.u32 2147483647, %v2569_v3  ;;  %v885_v62 = vadd.f32 1.0, %v884_v20  ;;  %v589_v21 = vmax.f32 %v2500_v5, 0.0 }
  0xb9   :  { %v621_v6 = vmul.f32 %v1653_v0, %v2500_v5  ;;  %v721_v15 = vsub.f32 0.0, %v689_v59  ;;  %v907_v31 = vsel %vm2564_vm11, %v904_v16, %v901_v30  ;;  %v895_v52 = vmul.f32 %v2502_v22, %v894_v36  ;;  %v2617_v16 = vpop.xlane.xlu2 %541 }
  0xba   :  { %v887_v17 = vand.u32 2147483647, %v2528_v10  ;;  %v720_v57 = vsub.f32 0.0, %v688_v4  ;;  %v1421_v25 = vsel %vm1409_vm4, %v1094_v51, 0.0  ;;  %v892_v45 = vmul.f32 0.6931472, %v1758_v47 }
  0xbb   :  { %v883_v13 = vmul.f32 0.6931472, %v1760_v54  ;;  %v588_v27 = vmax.f32 %v2510_v44, 0.0  ;;  %v1422_v5 = vadd.f32 %v1421_v25, %v1420_v7  ;;  %1765 = vlog2.f32 %v926_v1 }
  0xbc   :  { %v2588_v56 = vpop.eup %1761  ;;  %v620_v63 = vmul.f32 %v1652_v53, %v2510_v44  ;;  %v770_v41 = vmul.f32 1.442695, %v721_v15  ;;  %v1099_v22 = vadd.f32 %v907_v31, %v2496_v49  ;;  %v886_v34 = vmul.f32 %v2528_v10, %v885_v62 }
  0xbd   :  { %v2591_v24 = vpop.eup %1763  ;;  %v768_v61 = vmul.f32 1.442695, %v720_v57  ;;  %v687_v29 = vand.u32 2147483647, %v2584_v9  ;;  %vm2599_vm12 = vcmp.lt.f32.partialorder %v896_v58, 0.0004427343  ;;  %v2607_v7 = vsub.f32 %v589_v21, %v621_v6 }
  0xbe   :  { %vm2603_vm13 = vcmp.lt.f32.partialorder %v887_v17, 0.0004427343  ;;  %v1661_v49 = vunpack.c.h.bf16 %v1697_v18  ;;  %v898_v10 = vsel %vm2599_vm12, %v895_v52, %v892_v45  ;;  %v929_v19 = vmul.f32 -0.5, %v2562_v2 }
  0xbf   :  { %v889_v26 = vsel %vm2603_vm13, %v886_v34, %v883_v13  ;;  %v908_v20 = vadd.f32 1.0, %v2591_v24  ;;  %v1424_v0 = vadd.f32 %v1423_v12, %v1422_v5  ;;  %v917_v60 = vadd.f32 1.0, %v2588_v56 }
  0xc0   :  { %v593_v30 = vmax.f32 %v2560_v32, 0.0  ;;  %1767 = vpow2.f32 %v770_v41  ;;  %v2620_v36 = vsel %vm1409_vm4, %v1099_v22, 0.0  ;;  %v2622_v47 = vsub.f32 %v588_v27, %v620_v63  ;;  %v2649_v63 = vpop.xlane.xlu1 %538 }
  0xc1   :  { %1769 = vpow2.f32 %v768_v61  ;;  %v719_v51 = vsub.f32 0.0, %v687_v29  ;;  %v1766_v58 = vpop.eup %1765  ;;  %v1098_v59 = vadd.f32 %v898_v10, %v2545_v11  ;;  %v1097_v54 = vadd.f32 %v889_v26, %v2547_v28  ;;  %v2635_v28 = vld [vmem:[%s3016_s3 + $0x50] sm:$0xff]  }
  0xc2   :  { %1771 = vlog2.f32 %v908_v20  ;;  %v1660_v12 = vunpack.c.l.bf16 %v1697_v18  ;;  %v930_v1 = vadd.f32 1.0, %v929_v19  ;;  %v1657_v53 = vunpack.c.h.bf16 %v2494_v37 }
  0xc3   :  { %v766_v4 = vmul.f32 1.442695, %v719_v51  ;;  %v692_v62 = vand.u32 2147483647, %v2617_v16  ;;  %v1426_v21 = vadd.f32 %v2550_v14, %v1424_v0  ;;  %v932_v6 = vand.u32 2147483647, %v2562_v2 }
  0xc4   :  { %1773 = vlog2.f32 %v917_v60  ;;  %v625_v15 = vmul.f32 %v1661_v49, %v2560_v32  ;;  %v928_v31 = vmul.f32 0.6931472, %v1766_v58  ;;  %v911_v11 = vmul.f32 -0.5, %v2591_v24 }
  0xc5   :  { %1775 = vpow2.f32 %v766_v4  ;;  %v724_v37 = vsub.f32 0.0, %v692_v62  ;;  %v1429_v17 = vsel %vm1409_vm4, %v1098_v59, 0.0  ;;  %v1427_v14 = vsel %vm1409_vm4, %v1097_v54, 0.0  ;;  %v2673_v54 = vpop.xlane.xlu0 %535 }
  0xc6   :  { %v2637_v52 = vpop.eup %1767  ;;  %v592_v57 = vmax.f32 %v2569_v3, 0.0  ;;  %v624_v32 = vmul.f32 %v1660_v12, %v2569_v3  ;;  %v931_v45 = vmul.f32 %v2562_v2, %v930_v1  ;;  %v920_v13 = vmul.f32 -0.5, %v2588_v56 }
  0xc7   :  { %v2643_v25 = vpop.eup %1769  ;;  %v591_v27 = vmax.f32 %v2584_v9, 0.0  ;;  %v623_v5 = vmul.f32 %v1657_v53, %v2584_v9  ;;  %vm2651_vm14 = vcmp.lt.f32.partialorder %v932_v6, 0.0004427343  ;;  %v2655_v34 = vsub.f32 %v593_v30, %v625_v15 }
  0xc8   :  { %v1772_v41 = vpop.eup %1771  ;;  %v1668_v3 = vunpack.c.l.bf16 %v2635_v28  ;;  %v776_v18 = vmul.f32 1.442695, %v724_v37  ;;  %v1428_v61 = vadd.f32 %v1427_v14, %v1426_v21  ;;  %v934_v2 = vsel %vm2651_vm14, %v931_v45, %v928_v31 }
  0xc9   :  { %v912_v29 = vadd.f32 1.0, %v911_v11  ;;  %v953_v8 = vadd.f32 1.0, %v2637_v52  ;;  %v923_v44 = vand.u32 2147483647, %v2588_v56  ;;  %v914_v49 = vand.u32 2147483647, %v2591_v24 }
  0xca   :  { %v1774_v9 = vpop.eup %1773  ;;  %v2663_v10 = vsub.f32 %v592_v57, %v624_v32  ;;  %v691_v26 = vand.u32 2147483647, %v2649_v63  ;;  %v921_v20 = vadd.f32 1.0, %v920_v13  ;;  %v910_v0 = vmul.f32 0.6931472, %v1772_v41  ;;  %v2696_v32 = vpop.xlane.xlu2 %550 }
  0xcb   :  { %v2666_v19 = vpop.eup %1775  ;;  %v944_v60 = vadd.f32 1.0, %v2643_v25  ;;  %v2669_v30 = vsub.f32 %v591_v27, %v623_v5  ;;  %v1102_v51 = vadd.f32 %v934_v2, %v2555_v23  ;;  %1777 = vpow2.f32 %v776_v18 }
  0xcc   :  { %v935_v58 = vadd.f32 1.0, %v2666_v19  ;;  %v723_v59 = vsub.f32 0.0, %v691_v26  ;;  %v1430_v12 = vadd.f32 %v1429_v17, %v1428_v61  ;;  %v913_v1 = vmul.f32 %v2591_v24, %v912_v29 }
  0xcd   :  { %1779 = vlog2.f32 %v953_v8  ;;  %v956_v53 = vmul.f32 -0.5, %v2637_v52  ;;  %v919_v4 = vmul.f32 0.6931472, %v1774_v9  ;;  %vm2677_vm15 = vcmp.lt.f32.partialorder %v914_v49, 0.0004427343 }
  0xce   :  { %v959_v21 = vand.u32 2147483647, %v2637_v52  ;;  %1781 = vlog2.f32 %v935_v58  ;;  %v916_v23 = vsel %vm2677_vm15, %v913_v1, %v910_v0  ;;  %v774_v6 = vmul.f32 1.442695, %v723_v59 }
  0xcf   :  { %1783 = vlog2.f32 %v944_v60  ;;  %v690_v15 = vand.u32 2147483647, %v2673_v54  ;;  %v922_v24 = vmul.f32 %v2588_v56, %v921_v20  ;;  %vm2686_vm1 = vcmp.lt.f32.partialorder %v923_v44, 0.0004427343  ;;  %v2717_v44 = vpop.xlane.xlu1 %547 }
  0xd0   :  { %v596_v11 = vmax.f32 %v2617_v16, 0.0  ;;  %v628_v37 = vmul.f32 %v1668_v3, %v2617_v16  ;;  %v2693_v17 = vsel %vm1409_vm4, %v1102_v51, 0.0  ;;  %v957_v14 = vadd.f32 1.0, %v956_v53  ;;  %v1698_v16 = vld [vmem:[%s3016_s3 + $0x48] sm:$0xff]  }
  0xd1   :  { %v938_v57 = vmul.f32 -0.5, %v2666_v19  ;;  %1785 = vpow2.f32 %v774_v6  ;;  %v2698_v45 = vpop.eup %1777  ;;  %v925_v56 = vsel %vm2686_vm1, %v922_v24, %v919_v4  ;;  %v1100_v13 = vadd.f32 %v916_v23, %v2622_v47 }
  0xd2   :  { %v947_v27 = vmul.f32 -0.5, %v2643_v25  ;;  %v722_v5 = vsub.f32 0.0, %v690_v15  ;;  %v1432_v22 = vadd.f32 %v2620_v36, %v1430_v12  ;;  %vm2708_vm2 = vcmp.lt.f32.partialorder %v959_v21, 0.0004427343 }
  0xd3   :  { %v1780_v41 = vpop.eup %1779  ;;  %v1665_v18 = vunpack.c.h.bf16 %v1698_v16  ;;  %v595_v61 = vmax.f32 %v2649_v63, 0.0  ;;  %v950_v47 = vand.u32 2147483647, %v2643_v25  ;;  %v2714_v29 = vsub.f32 %v596_v11, %v628_v37 }
  0xd4   :  { %v1782_v2 = vpop.eup %1781  ;;  %v772_v8 = vmul.f32 1.442695, %v722_v5  ;;  %v695_v9 = vand.u32 2147483647, %v2696_v32  ;;  %v1101_v36 = vadd.f32 %v925_v56, %v2607_v7  ;;  %v958_v26 = vmul.f32 %v2637_v52, %v957_v14 }
  0xd5   :  { %v1784_v49 = vpop.eup %1783  ;;  %v939_v20 = vadd.f32 1.0, %v938_v57  ;;  %v980_v0 = vadd.f32 1.0, %v2698_v45  ;;  %v1433_v60 = vsel %vm1409_vm4, %v1100_v13, 0.0  ;;  %v948_v51 = vadd.f32 1.0, %v947_v27  ;;  %v2748_v13 = vpop.xlane.xlu0 %544 }
  0xd6   :  { %v941_v58 = vand.u32 2147483647, %v2666_v19  ;;  %1787 = vpow2.f32 %v772_v8  ;;  %v937_v12 = vmul.f32 0.6931472, %v1782_v2  ;;  %v627_v1 = vmul.f32 %v1665_v18, %v2649_v63 }
  0xd7   :  { %v2724_v59 = vpop.eup %1785  ;;  %v727_v53 = vsub.f32 0.0, %v695_v9  ;;  %v694_v4 = vand.u32 2147483647, %v2717_v44  ;;  %v955_v7 = vmul.f32 0.6931472, %v1780_v41  ;;  %v1664_v21 = vunpack.c.l.bf16 %v1698_v16 }
  0xd8   :  { %v946_v62 = vmul.f32 0.6931472, %v1784_v49  ;;  %vm2728_vm3 = vcmp.lt.f32.partialorder %v950_v47, 0.0004427343  ;;  %v1434_v23 = vadd.f32 %v1433_v60, %v1432_v22  ;;  %v940_v6 = vmul.f32 %v2666_v19, %v939_v20  ;;  %v1700_v19 = vld [vmem:[%s3016_s3 + $0x58] sm:$0xff]  }
  0xd9   :  { %1789 = vlog2.f32 %v980_v0  ;;  %v726_v15 = vsub.f32 0.0, %v694_v4  ;;  %v1435_v24 = vsel %vm1409_vm4, %v1101_v36, 0.0  ;;  %v949_v31 = vmul.f32 %v2643_v25, %v948_v51 }
  0xda   :  { %vm2735_vm5 = vcmp.lt.f32.partialorder %v941_v58, 0.0004427343  ;;  %v971_v11 = vadd.f32 1.0, %v2724_v59  ;;  %v2742_v14 = vsub.f32 %v595_v61, %v627_v1  ;;  %v594_v57 = vmax.f32 %v2673_v54, 0.0  ;;  %v2768_v58 = vpop.xlane.xlu2 %559 }
  0xdb   :  { %v943_v37 = vsel %vm2735_vm5, %v940_v6, %v937_v12  ;;  %v782_v56 = vmul.f32 1.442695, %v727_v53  ;;  %v961_v27 = vsel %vm2708_vm2, %v958_v26, %v955_v7  ;;  %v952_v16 = vsel %vm2728_vm3, %v949_v31, %v946_v62  ;;  %v2787_v31 = vpop.xlane.xlu1 %556 }
  0xdc   :  { %v2750_v25 = vpop.eup %1787  ;;  %v983_v5 = vmul.f32 -0.5, %v2698_v45  ;;  %v780_v41 = vmul.f32 1.442695, %v726_v15  ;;  %v1436_v22 = vadd.f32 %v1435_v24, %v1434_v23  ;;  %v626_v18 = vmul.f32 %v1664_v21, %v2673_v54 }
  0xdd   :  { %v962_v61 = vadd.f32 1.0, %v2750_v25  ;;  %v1673_v2 = vunpack.c.h.bf16 %v1700_v19  ;;  %v1103_v47 = vadd.f32 %v943_v37, %v2669_v30  ;;  %1791 = vlog2.f32 %v971_v11 }
  0xde   :  { %v1672_v8 = vunpack.c.l.bf16 %v1700_v19  ;;  %v693_v9 = vand.u32 2147483647, %v2748_v13  ;;  %v1105_v49 = vadd.f32 %v961_v27, %v2655_v34  ;;  %v1104_v36 = vadd.f32 %v952_v16, %v2663_v10 }
  0xdf   :  { %v1790_v3 = vpop.eup %1789  ;;  %v986_v26 = vand.u32 2147483647, %v2698_v45  ;;  %1793 = vpow2.f32 %v782_v56  ;;  %v984_v20 = vadd.f32 1.0, %v983_v5  ;;  %v599_v54 = vmax.f32 %v2696_v32, 0.0  ;;  %v2804_v5 = vld [vmem:[%s3016_s3 + $0x68] sm:$0xff]  }
  0xe0   :  { %1795 = vpow2.f32 %v780_v41  ;;  %v725_v0 = vsub.f32 0.0, %v693_v9  ;;  %v974_v60 = vmul.f32 -0.5, %v2724_v59  ;;  %v631_v30 = vmul.f32 %v1673_v2, %v2696_v32  ;;  %v2806_v41 = vpop.xlane.xlu0 %553 }
  0xe1   :  { %1797 = vlog2.f32 %v962_v61  ;;  %v598_v51 = vmax.f32 %v2717_v44, 0.0  ;;  %v1439_v34 = vsel %vm1409_vm4, %v1103_v47, 0.0  ;;  %v982_v10 = vmul.f32 0.6931472, %v1790_v3 }
  0xe2   :  { %v630_v12 = vmul.f32 %v1672_v8, %v2717_v44  ;;  %v778_v1 = vmul.f32 1.442695, %v725_v0  ;;  %v1438_v53 = vadd.f32 %v2693_v17, %v1436_v22  ;;  %v2773_v4 = vsub.f32 %v594_v57, %v626_v18 }
  0xe3   :  { %v965_v7 = vmul.f32 -0.5, %v2750_v25  ;;  %v1669_v62 = vunpack.c.h.bf16 %v2635_v28  ;;  %v1792_v52 = vpop.eup %1791  ;;  %v1443_v32 = vsel %vm1409_vm4, %v1105_v49, 0.0  ;;  %v985_v21 = vmul.f32 %v2698_v45, %v984_v20 }
  0xe4   :  { %v977_v23 = vand.u32 2147483647, %v2724_v59  ;;  %v698_v6 = vand.u32 2147483647, %v2768_v58  ;;  %v1440_v44 = vadd.f32 %v1439_v34, %v1438_v53  ;;  %vm2783_vm6 = vcmp.lt.f32.partialorder %v986_v26, 0.0004427343 }
  0xe5   :  { %v2781_v15 = vpop.eup %1793  ;;  %v975_v24 = vadd.f32 1.0, %v974_v60  ;;  %1799 = vpow2.f32 %v778_v1  ;;  %v1441_v63 = vsel %vm1409_vm4, %v1104_v36, 0.0  ;;  %v988_v45 = vsel %vm2783_vm6, %v985_v21, %v982_v10 }
  0xe6   :  { %v2789_v28 = vpop.eup %1795  ;;  %v2794_v11 = vsub.f32 %v599_v54, %v631_v30  ;;  %v2796_v37 = vsub.f32 %v598_v51, %v630_v12  ;;  %v966_v19 = vadd.f32 1.0, %v965_v7  ;;  %v968_v56 = vand.u32 2147483647, %v2750_v25 }
  0xe7   :  { %v1798_v57 = vpop.eup %1797  ;;  %v597_v27 = vmax.f32 %v2748_v13, 0.0  ;;  %v629_v16 = vmul.f32 %v1669_v62, %v2748_v13  ;;  %vm2808_vm7 = vcmp.lt.f32.partialorder %v977_v23, 0.0004427343  ;;  %v1007_v18 = vadd.f32 1.0, %v2781_v15  ;;  %v1701_v62 = vld [vmem:[%s3016_s3 + $0x60] sm:$0xff]  }
  0xe8   :  { %v730_v61 = vsub.f32 0.0, %v698_v6  ;;  %v697_v2 = vand.u32 2147483647, %v2787_v31  ;;  %v1442_v47 = vadd.f32 %v1441_v63, %v1440_v44  ;;  %v973_v8 = vmul.f32 0.6931472, %v1792_v52 }
  0xe9   :  { %v976_v13 = vmul.f32 %v2724_v59, %v975_v24  ;;  %v998_v9 = vadd.f32 1.0, %v2789_v28  ;;  %v1108_v3 = vadd.f32 %v988_v45, %v2714_v29  ;;  %v964_v49 = vmul.f32 0.6931472, %v1798_v57  ;;  %v2845_v24 = vpop.xlane.xlu2 %568 }
  0xea   :  { %v729_v36 = vsub.f32 0.0, %v697_v2  ;;  %v696_v26 = vand.u32 2147483647, %v2806_v41  ;;  %v967_v54 = vmul.f32 %v2750_v25, %v966_v19  ;;  %vm2821_vm8 = vcmp.lt.f32.partialorder %v968_v56, 0.0004427343  ;;  %v2848_v19 = vpop.xlane.xlu1 %565 }
  0xeb   :  { %v2818_v20 = vpop.eup %1799  ;;  %v2825_v60 = vsub.f32 %v597_v27, %v629_v16  ;;  %v1680_v59 = vunpack.c.l.bf16 %v2804_v5  ;;  %1801 = vlog2.f32 %v1007_v18  ;;  %v1010_v30 = vmul.f32 -0.5, %v2781_v15 }
  0xec   :  { %v989_v29 = vadd.f32 1.0, %v2818_v20  ;;  %v788_v51 = vmul.f32 1.442695, %v730_v61  ;;  %v979_v34 = vsel %vm2808_vm7, %v976_v13, %v973_v8  ;;  %1803 = vlog2.f32 %v998_v9 }
  0xed   :  { %v786_v10 = vmul.f32 1.442695, %v729_v36  ;;  %v728_v25 = vsub.f32 0.0, %v696_v26  ;;  %v2833_v12 = vsel %vm1409_vm4, %v1108_v3, 0.0  ;;  %v970_v1 = vsel %vm2821_vm8, %v967_v54, %v964_v49 }
  0xee   :  { %v1001_v53 = vmul.f32 -0.5, %v2789_v28  ;;  %v602_v7 = vmax.f32 %v2768_v58, 0.0  ;;  %v1013_v52 = vand.u32 2147483647, %v2781_v15  ;;  %1805 = vlog2.f32 %v989_v29 }
  0xef   :  { %v1677_v21 = vunpack.c.h.bf16 %v1701_v62  ;;  %v784_v23 = vmul.f32 1.442695, %v728_v25  ;;  %v1107_v6 = vadd.f32 %v979_v34, %v2742_v14  ;;  %v1011_v44 = vadd.f32 1.0, %v1010_v30 }
  0xf0   :  { %v634_v17 = vmul.f32 %v1680_v59, %v2768_v58  ;;  %1807 = vpow2.f32 %v788_v51  ;;  %v1444_v63 = vadd.f32 %v1443_v32, %v1442_v47  ;;  %v1106_v45 = vadd.f32 %v970_v1, %v2773_v4 }
  0xf1   :  { %1809 = vpow2.f32 %v786_v10  ;;  %v1676_v57 = vunpack.c.l.bf16 %v1701_v62  ;;  %v1802_v56 = vpop.eup %1801  ;;  %v1002_v27 = vadd.f32 1.0, %v1001_v53  ;;  %v1004_v16 = vand.u32 2147483647, %v2789_v28 }
  0xf2   :  { %v992_v22 = vmul.f32 -0.5, %v2818_v20  ;;  %v601_v14 = vmax.f32 %v2787_v31, 0.0  ;;  %v1804_v18 = vpop.eup %1803  ;;  %vm2853_vm9 = vcmp.lt.f32.partialorder %v1013_v52, 0.0004427343  ;;  %v633_v32 = vmul.f32 %v1677_v21, %v2787_v31 }
  0xf3   :  { %1811 = vpow2.f32 %v784_v23  ;;  %v701_v4 = vand.u32 2147483647, %v2845_v24  ;;  %v1447_v61 = vsel %vm1409_vm4, %v1107_v6, 0.0  ;;  %v1012_v2 = vmul.f32 %v2781_v15, %v1011_v44 }
  0xf4   :  { %v2861_v47 = vsub.f32 %v602_v7, %v634_v17  ;;  %v600_v8 = vmax.f32 %v2806_v41, 0.0  ;;  %v1806_v13 = vpop.eup %1805  ;;  %v1445_v9 = vsel %vm1409_vm4, %v1106_v45, 0.0  ;;  %v1009_v3 = vmul.f32 0.6931472, %v1802_v56 }
  0xf5   :  { %v632_v49 = vmul.f32 %v1676_v57, %v2806_v41  ;;  %v700_v36 = vand.u32 2147483647, %v2848_v19  ;;  %v1000_v26 = vmul.f32 0.6931472, %v1804_v18  ;;  %v1003_v54 = vmul.f32 %v2789_v28, %v1002_v27  ;;  %v1703_v41 = vld [vmem:[%s3016_s3 + $0x70] sm:$0xff]   ;;  %v2899_v27 = vpop.xlane.xlu1 %574 }
  0xf6   :  { %v2867_v31 = vpop.eup %1807  ;;  %vm2870_vm10 = vcmp.lt.f32.partialorder %v1004_v16, 0.0004427343  ;;  %v993_v15 = vadd.f32 1.0, %v992_v22  ;;  %v995_v30 = vand.u32 2147483647, %v2818_v20  ;;  %v2877_v29 = vsub.f32 %v601_v14, %v633_v32 }
  0xf7   :  { %v2874_v59 = vpop.eup %1809  ;;  %v733_v51 = vsub.f32 0.0, %v701_v4  ;;  %v732_v34 = vsub.f32 0.0, %v700_v36  ;;  %v1446_v10 = vadd.f32 %v1445_v9, %v1444_v63  ;;  %v991_v25 = vmul.f32 0.6931472, %v1806_v13  ;;  %v2892_v63 = vpop.xlane.xlu0 %562 }
  0xf8   :  { %v1685_v28 = vunpack.c.h.bf16 %v1703_v41  ;;  %v605_v1 = vmax.f32 %v2845_v24, 0.0  ;;  %v1015_v7 = vsel %vm2853_vm9, %v1012_v2, %v1009_v3  ;;  %v1034_v62 = vadd.f32 1.0, %v2867_v31 }
  0xf9   :  { %v1812_v53 = vpop.eup %1811  ;;  %v2886_v52 = vsub.f32 %v600_v8, %v632_v49  ;;  %v792_v21 = vmul.f32 1.442695, %v732_v34  ;;  %v1006_v23 = vsel %vm2870_vm10, %v1003_v54, %v1000_v26  ;;  %v994_v6 = vmul.f32 %v2818_v20, %v993_v15 }
  0xfa   :  { %v1025_v44 = vadd.f32 1.0, %v2874_v59  ;;  %v1016_v17 = vadd.f32 1.0, %v1812_v53  ;;  %vm2894_vm11 = vcmp.lt.f32.partialorder %v995_v30, 0.0004427343  ;;  %v1037_v57 = vmul.f32 -0.5, %v2867_v31 }
  0xfb   :  { %v794_v56 = vmul.f32 1.442695, %v733_v51  ;;  %1813 = vpow2.f32 %v792_v21  ;;  %v1448_v16 = vadd.f32 %v1447_v61, %v1446_v10  ;;  %v997_v22 = vsel %vm2894_vm11, %v994_v6, %v991_v25 }
  0xfc   :  { %1815 = vlog2.f32 %v1016_v17  ;;  %v1019_v20 = vmul.f32 -0.5, %v1812_v53  ;;  %v1111_v14 = vadd.f32 %v1015_v7, %v2794_v11  ;;  %v1110_v18 = vadd.f32 %v1006_v23, %v2796_v37 }
  0xfd   :  { %1817 = vlog2.f32 %v1034_v62  ;;  %v699_v58 = vand.u32 2147483647, %v2892_v63  ;;  %v637_v32 = vmul.f32 %v1685_v28, %v2845_v24  ;;  %v1684_v4 = vunpack.c.l.bf16 %v1703_v41 }
  0xfe   :  { %1819 = vlog2.f32 %v1025_v44  ;;  %v703_v2 = vand.u32 2147483647, %v2899_v27  ;;  %v1109_v61 = vadd.f32 %v997_v22, %v2825_v60  ;;  %v1038_v8 = vadd.f32 1.0, %v1037_v57 }
  0xff   :  { %1821 = vpow2.f32 %v794_v56  ;;  %v731_v13 = vsub.f32 0.0, %v699_v58  ;;  %v1040_v9 = vand.u32 2147483647, %v2867_v31  ;;  %v1028_v11 = vmul.f32 -0.5, %v2874_v59  ;;  %v2929_v23 = vpop.xlane.xlu0 %571 }
 0x100   :  { %v1020_v3 = vadd.f32 1.0, %v1019_v20  ;;  %v735_v37 = vsub.f32 0.0, %v703_v2  ;;  %v1455_v36 = vsel %vm1409_vm4, %v1111_v14, 0.0  ;;  %v1450_v24 = vadd.f32 %v2833_v12, %v1448_v16 }
 0x101   :  { %v2911_v49 = vpop.eup %1813  ;;  %v1022_v26 = vand.u32 2147483647, %v1812_v53  ;;  %v790_v54 = vmul.f32 1.442695, %v731_v13  ;;  %v1453_v60 = vsel %vm1409_vm4, %v1110_v18, 0.0  ;;  %v2917_v30 = vsub.f32 %v605_v1, %v637_v32 }
 0x102   :  { %v1816_v0 = vpop.eup %1815  ;;  %v1031_v15 = vand.u32 2147483647, %v2874_v59  ;;  %v604_v41 = vmax.f32 %v2848_v19, 0.0  ;;  %v1451_v34 = vsel %vm1409_vm4, %v1109_v61, 0.0  ;;  %v2922_v10 = vmul.f32 %v2867_v31, %v1038_v8 }
 0x103   :  { %v1818_v51 = vpop.eup %1817  ;;  %v1018_v25 = vmul.f32 0.6931472, %v1816_v0  ;;  %v636_v12 = vmul.f32 %v1684_v4, %v2848_v19  ;;  %vm2925_vm12 = vcmp.lt.f32.partialorder %v1040_v9, 0.0004427343  ;;  %v1029_v62 = vadd.f32 1.0, %v1028_v11 }
 0x104   :  { %v1820_v28 = vpop.eup %1819  ;;  %v1021_v21 = vmul.f32 %v1812_v53, %v1020_v3  ;;  %1823 = vpow2.f32 %v790_v54  ;;  %v798_v1 = vmul.f32 1.442695, %v735_v37  ;;  %vm2933_vm13 = vcmp.lt.f32.partialorder %v1022_v26, 0.0004427343 }
 0x105   :  { %v2931_v6 = vpop.eup %1821  ;;  %v1052_v31 = vadd.f32 1.0, %v2911_v49  ;;  %v1681_v19 = vunpack.c.h.bf16 %v2804_v5  ;;  %v603_v17 = vmax.f32 %v2892_v63, 0.0  ;;  %v1452_v45 = vadd.f32 %v1451_v34, %v1450_v24 }
 0x106   :  { %vm2940_vm14 = vcmp.lt.f32.partialorder %v1031_v15, 0.0004427343  ;;  %v1024_v53 = vsel %vm2933_vm13, %v1021_v21, %v1018_v25  ;;  %1825 = vpow2.f32 %v798_v1  ;;  %v1027_v56 = vmul.f32 0.6931472, %v1820_v28 }
 0x107   :  { %v702_v16 = vand.u32 2147483647, %v2929_v23  ;;  %v1246_v22 = vadd.f32 %v2322_v42, %v2320_v40  ;;  %v1247_v5 = vadd.f32 %v2316_v38, %v2313_v35  ;;  %v1036_v20 = vmul.f32 0.6931472, %v1818_v51 }
 0x108   :  { %v1030_v14 = vmul.f32 %v2874_v59, %v1029_v62  ;;  %v1061_v18 = vadd.f32 1.0, %v2931_v6  ;;  %v1538_v58 = vadd.f32 %v2311_v33, %v2256_v48  ;;  %v1112_v32 = vadd.f32 %v1024_v53, %v2886_v52  ;;  %v1704_v53 = vld [vmem:[%s3016_s3 + $0x78] sm:$0xff]   ;;  %s1891_s3 = smov [#allocation4]  }
 0x109   :  { %1827 = vlog2.f32 %v1052_v31  ;;  %v734_v4 = vsub.f32 0.0, %v702_v16  ;;  %v1310_v2 = vadd.f32 %v2324_v43, %v1246_v22  ;;  %v1454_v8 = vadd.f32 %v1453_v60, %v1452_v45  ;;  %s1575_s11 = sshll.u32 %s1891_s3, 4  ;;  %s1576_s11 = int_to_ptr.vmem [resolvable:$true] %s1575_s11 }
 0x10a   :  { %v1824_v61 = vpop.eup %1823  ;;  %v1311_v40 = vadd.f32 %v2318_v39, %v1247_v5  ;;  %v1540_v35 = vadd.f32 %v2327_v46, %v1538_v58  ;;  %v1541_v38 = vsel %vm479_vm0, %v2258_v55, 0.0  ;;  %v1033_v42 = vsel %vm2940_vm14, %v1030_v14, %v1027_v56 }
 0x10b   :  { %v1055_v48 = vmul.f32 -0.5, %v2911_v49  ;;  %v635_v33 = vmul.f32 %v1681_v19, %v2892_v63  ;;  %v1043_v59 = vadd.f32 1.0, %v1824_v61  ;;  %1829 = vlog2.f32 %v1061_v18 }
 0x10c   :  { %v2965_v52 = vpop.eup %1825  ;;  %v1046_v43 = vmul.f32 -0.5, %v1824_v61  ;;  %v796_v13 = vmul.f32 1.442695, %v734_v4  ;;  %v1543_v39 = vsel %vm479_vm0, %v2254_v50, 0.0  ;;  %v1042_v55 = vsel %vm2925_vm12, %v2922_v10, %v1036_v20 }
 0x10d   :  { %v1457_v46 = vsel %vm1409_vm4, %v1112_v32, 0.0  ;;  %1831 = vlog2.f32 %v1043_v59  ;;  %v1542_v9 = vadd.f32 %v1541_v38, %v1540_v35  ;;  %v1456_v11 = vadd.f32 %v1455_v36, %v1454_v8 }
 0x10e   :  { %v1064_v63 = vmul.f32 -0.5, %v2931_v6  ;;  %1833 = vpow2.f32 %v796_v13  ;;  %v1545_v3 = vsel %vm479_vm0, %v1310_v2, 0.0  ;;  %v1113_v24 = vadd.f32 %v1033_v42, %v2877_v29 }
 0x10f   :  { %v1828_v37 = vpop.eup %1827  ;;  %v1056_v26 = vadd.f32 1.0, %v1055_v48  ;;  %v1544_v54 = vadd.f32 %v1543_v39, %v1542_v9  ;;  %v1079_v50 = vadd.f32 1.0, %v2965_v52  ;;  %v1458_v0 = vadd.f32 %v1457_v46, %v1456_v11 }
 0x110   :  { %v668_v60 = vsub.f32 %v604_v41, %v636_v12  ;;  %v1047_v15 = vadd.f32 1.0, %v1046_v43  ;;  %v1547_v51 = vsel %vm479_vm0, %v1311_v40, 0.0  ;;  %v1058_v34 = vand.u32 2147483647, %v2911_v49 }
 0x111   :  { %v1049_v36 = vand.u32 2147483647, %v1824_v61  ;;  %v1546_v10 = vadd.f32 %v1545_v3, %v1544_v54  ;;  %1835 = vlog2.f32 %v1079_v50  ;;  %v1830_v25 = vpop.eup %1829  ;;  %v1114_v28 = vadd.f32 %v1042_v55, %v2861_v47 }
 0x112   :  { %v1067_v7 = vand.u32 2147483647, %v2931_v6  ;;  %v1054_v29 = vmul.f32 0.6931472, %v1828_v37  ;;  %v667_v62 = vsub.f32 %v603_v17, %v635_v33  ;;  %v1459_v1 = vsel %vm1409_vm4, %v1113_v24, 0.0 }
 0x113   :  { %v1832_v21 = vpop.eup %1831  ;;  %v1065_v44 = vadd.f32 1.0, %v1064_v63  ;;  %v1057_v41 = vmul.f32 %v2911_v49, %v1056_v26  ;;  %v1548_v12 = vadd.f32 %v1547_v51, %v1546_v10  ;;  %v1460_v19 = vadd.f32 %v1459_v1, %v1458_v0 }
 0x114   :  { %v1834_v31 = vpop.eup %1833  ;;  %v1045_v45 = vmul.f32 0.6931472, %v1832_v21  ;;  %v1048_v57 = vmul.f32 %v1824_v61, %v1047_v15  ;;  %v1082_v47 = vmul.f32 -0.5, %v2965_v52  ;;  %vm2987_vm0 = vcmp.lt.f32.partialorder %v1058_v34, 0.0004427343 }
 0x115   :  { %vm1050_vm15 = vcmp.lt.f32.partialorder %v1049_v36, 0.0004427343  ;;  %v1689_v17 = vunpack.c.h.bf16 %v1704_v53  ;;  %1549 = vadd.xlane.f32.xlu0 %v1548_v12  ;;  %v1070_v16 = vadd.f32 1.0, %v1834_v31  ;;  %v1063_v49 = vmul.f32 0.6931472, %v1830_v25 }
 0x116   :  { %v1060_v22 = vsel %vm2987_vm0, %v1057_v41, %v1054_v29  ;;  %v1051_v5 = vsel %vm1050_vm15, %v1048_v57, %v1045_v45  ;;  %v1073_v20 = vmul.f32 -0.5, %v1834_v31  ;;  %v1461_v18 = vsel %vm1409_vm4, %v1114_v28, 0.0 }
 0x117   :  { %v1836_v14 = vpop.eup %1835  ;;  %v1115_v58 = vadd.f32 %v1051_v5, %v667_v62  ;;  %v1688_v32 = vunpack.c.l.bf16 %v1704_v53  ;;  %1837 = vlog2.f32 %v1070_v16  ;;  %v1066_v4 = vmul.f32 %v2931_v6, %v1065_v44 }
 0x118   :  { %v607_v2 = vmax.f32 %v2899_v27, 0.0  ;;  %v1083_v61 = vadd.f32 1.0, %v1082_v47  ;;  %v1462_v8 = vadd.f32 %v1461_v18, %v1460_v19  ;;  %vm1068_vm1 = vcmp.lt.f32.partialorder %v1067_v7, 0.0004427343 }
 0x119   :  { %v1116_v40 = vadd.f32 %v1060_v22, %v668_v60  ;;  %v1463_v35 = vsel %vm1409_vm4, %v1115_v58, 0.0  ;;  %v1085_v38 = vand.u32 2147483647, %v2965_v52  ;;  %v1069_v42 = vsel %vm1068_vm1, %v1066_v4, %v1063_v49 }
 0x11a   :  { %v1074_v48 = vadd.f32 1.0, %v1073_v20  ;;  %v1081_v33 = vmul.f32 0.6931472, %v1836_v14  ;;  %v1464_v59 = vadd.f32 %v1463_v35, %v1462_v8  ;;  %v639_v43 = vmul.f32 %v1689_v17, %v2899_v27 }
 0x11b   :  { %v606_v13 = vmax.f32 %v2929_v23, 0.0  ;;  %v638_v6 = vmul.f32 %v1688_v32, %v2929_v23  ;;  %v1076_v39 = vand.u32 2147483647, %v1834_v31  ;;  %v1084_v55 = vmul.f32 %v2965_v52, %v1083_v61 }
 0x11c   :  { %v1117_v9 = vadd.f32 %v1069_v42, %v2917_v30  ;;  %vm1086_vm2 = vcmp.lt.f32.partialorder %v1085_v38, 0.0004427343  ;;  %v1465_v11 = vsel %vm1409_vm4, %v1116_v40, 0.0  ;;  %v1075_v3 = vmul.f32 %v1834_v31, %v1074_v48 }
 0x11d   :  { %v1838_v46 = vpop.eup %1837  ;;  %v1087_v37 = vsel %vm1086_vm2, %v1084_v55, %v1081_v33  ;;  %v1466_v24 = vadd.f32 %v1465_v11, %v1464_v59  ;;  %v671_v26 = vsub.f32 %v607_v2, %v639_v43  ;;  %v670_v54 = vsub.f32 %v606_v13, %v638_v6 }
 0x11e   :  { %v1072_v63 = vmul.f32 0.6931472, %v1838_v46  ;;  %vm1077_vm3 = vcmp.lt.f32.partialorder %v1076_v39, 0.0004427343  ;;  %v1467_v23 = vsel %vm1409_vm4, %v1117_v9, 0.0 }
 0x11f   :  { %v1119_v0 = vadd.f32 %v1087_v37, %v671_v26  ;;  %v1468_v60 = vadd.f32 %v1467_v23, %v1466_v24 }
 0x120   :  { %v1078_v27 = vsel %vm1077_vm3, %v1075_v3, %v1072_v63 }
 0x121   :  { %v1118_v50 = vadd.f32 %v1078_v27, %v670_v54  ;;  %v1471_v30 = vsel %vm1409_vm4, %v1119_v0, 0.0 }
 0x123   :  { %v1469_v52 = vsel %vm1409_vm4, %v1118_v50, 0.0 }
 0x124   :  { %v1470_v15 = vadd.f32 %v1469_v52, %v1468_v60 }
 0x126   :  { %v1472_v51 = vadd.f32 %v1471_v30, %v1470_v15 }
 0x128   :  { %1473 = vadd.xlane.f32.xlu2 %v1472_v51 }
 0x188   :  { %v1550_v34 = vpop.xlane.xlu0 %1549 }
 0x189   :  { %v1551_v36 = vrot.slane %v1550_v34, 4 }
 0x18b   :  { %v1552_v10 = vadd.f32 %v1551_v36, %v1550_v34 }
 0x18d   :  { %v1553_v25 = vrot.slane %v1552_v10, 2 }
 0x18f   :  { %v1554_v62 = vadd.f32 %v1553_v25, %v1552_v10 }
 0x191   :  { %v1555_v44 = vrot.slane %v1554_v62, 1 }
 0x193   :  { %v1556_v31 = vadd.f32 %v1555_v44, %v1554_v62 }
 0x19b   :  { %v1474_v28 = vpop.xlane.xlu2 %1473 }
 0x19c   :  { %v1475_v7 = vrot.slane %v1474_v28, 4 }
 0x19e   :  { %v1476_v29 = vadd.f32 %v1475_v7, %v1474_v28 }
 0x1a0   :  { %v1477_v21 = vrot.slane %v1476_v29, 2 }
 0x1a2   :  { %v1478_v1 = vadd.f32 %v1477_v21, %v1476_v29 }
 0x1a4   :  { %v1479_v41 = vrot.slane %v1478_v1, 1 }
 0x1a6   :  { %v1480_v12 = vadd.f32 %v1479_v41, %v1478_v1 }
 0x1a8   :  { %1705 = vpush %v1480_v12 }
 0x1a9   :  { %1707 = vpush %v1556_v31 }
 0x1d9   :  { %s1706_s17 = spop %1705 }
 0x1da   :  { %v1482_v19 = vstv %s1706_s17  ;;  %s1708_s21 = spop %1707 }
 0x1db   :  { %v1565_v45 = vmul.f32 0.00390625, %v1482_v19  ;;  %v1558_v57 = vstv %s1708_s21 }
 0x1dc   :  { %v1568_v53 = vmul.f32 6.1035156e-05, %v1558_v57 }
 0x1dd   :  { %1566 = vst [vmem:[#allocation4] sm:$0xff] %v1565_v45 }
 0x1de   :  { %1569 = vst [vmem:[#allocation6] sm:$0xff] %v1568_v53  ;;  %1580 = dma.vmem_to_hbm [thread:$0]  %s1576_s11, 128, %s1578_s14, [#allocation5]  }
 0x1df   :  { %1591 = dma.vmem_to_hbm [thread:$0]  %s1587_s16, 128, %s1589_s20, [#allocation7]  }
 0x1e0   :  { %1887 = dma.done.wait [#allocation5], 128  }
 0x1e1   :  { %1888 = vsyncadd [#allocation5], 4294967168 }
 0x1e2   :  { %1889 = dma.done.wait [#allocation7], 128  }
 0x1e3   :  { %1890 = vsyncadd [#allocation7], 4294967168 }
 0x1e4   :  { %1600 = vsyncpa [#allocation5], 1 }
 0x1e5   :  { %1601 = vsyncpa [#allocation7], 1 }

</bundles_post_ra>
